<compile_context>
chip_gen: v7x
topology: tpu7x:2x2x1
jax: 0.10.0
libtpu: 0.0.40
codegen_flags: <defaults>
</compile_context>

<pallas_src>
import jax
import jax.numpy as jnp
from jax.experimental import pallas as pl
from jax.experimental.pallas import tpu as pltpu


# ---------------------------------------------------------------------------
# Sizing helpers (generation aware).
# ---------------------------------------------------------------------------

def _tpu_vmem_capacity():
    try:
        return int(pltpu.get_tpu_info().vmem_capacity_bytes)
    except Exception:
        return 64 << 20          # conservative (v7x-sized) fallback


def _step_tmp_bytes(b, tq, tk):
    # Live f32 intermediates per grid step: g (2B,TQ,TK), e1/e2, scaled copies,
    # |diff| — generous upper bound so the compiler never runs out of scratch.
    return 10 * b * tq * tk * 4


def _budget(vmem_cap_bytes):
    """(vmem_limit cap, per-step intermediate budget, tile candidates)."""
    if vmem_cap_bytes >= (96 << 20):            # v5e / v6e: 128 MiB physical
        return (100 << 20), (60 << 20), (1024, 512, 256, 128)
    # v7x: 64 MiB physical per TensorCore -> leave headroom for compiler
    # internal scratch / DMA descriptors (and each TC holds its own slab copy).
    return (56 << 20), (20 << 20), (512, 256, 128)


# ---------------------------------------------------------------------------
# Kernel.
# ---------------------------------------------------------------------------

def _make_kernel(b, tq, tk, channels_last, resident):
    """Builds the per-(q,k)-tile kernel for one feature pair.

    The single input slab holds BOTH features stacked on batch: (2B, ...).
    out_ref: (1, 8, TK) lane-dense per-q-tile partial sums of |aff1 - aff2|.
    acc_ref: (8, TK) f32 VMEM accumulator over the k grid axis.
    """

    def _step(fq, fk, out_ref, acc_ref):
        k = pl.program_id(1)

        @pl.when(k == 0)
        def _():
            acc_ref[...] = jnp.zeros_like(acc_ref)

        if channels_last:   # tiles are (2B, T, C): contract over lane-resident C
            g = jnp.einsum("bqc,bkc->bqk", fq, fk,
                           preferred_element_type=jnp.float32)
        else:               # tiles are (2B, Cp, T)
            g = jnp.einsum("bcq,bck->bqk", fq, fk,
                           preferred_element_type=jnp.float32)

        # torch F.softmax with no `dim` on a 3-D tensor -> softmax over dim 0
        # (the batch dim), computed independently per feature.  No reduction
        # over (q, k), so tiling both affinity axes is exact.
        g1, g2 = g[:b], g[b:]
        e1 = jnp.exp(g1 - jnp.max(g1, axis=0, keepdims=True))
        e2 = jnp.exp(g2 - jnp.max(g2, axis=0, keepdims=True))
        r1 = 1.0 / jnp.sum(e1, axis=0, keepdims=True)   # exact normalization
        r2 = 1.0 / jnp.sum(e2, axis=0, keepdims=True)

        d = jnp.sum(jnp.abs(e1 * r1 - e2 * r2), axis=0)          # (TQ, TK)
        # vreg-shaped partial reduction: only full-vreg VPU adds per k step;
        # no cross-lane XLU reduce and no scalar loop-carried dependency.
        d = jnp.sum(d.reshape(tq // 8, 8, tk), axis=0)           # (8, TK)
        acc_ref[...] += d

        @pl.when(k == pl.num_programs(1) - 1)
        def _():
            out_ref[...] = acc_ref[...].reshape(out_ref.shape)

    if resident:
        def kernel(slab_ref, out_ref, acc_ref):
            q0 = pl.multiple_of(pl.program_id(0) * tq, 128)
            k0 = pl.multiple_of(pl.program_id(1) * tk, 128)
            if channels_last:            # slab: (2B, HWp, C)
                fq = slab_ref[:, pl.ds(q0, tq), :]
                fk = slab_ref[:, pl.ds(k0, tk), :]
            else:                        # slab: (2B, Cp, HWp)
                fq = slab_ref[:, :, pl.ds(q0, tq)]
                fk = slab_ref[:, :, pl.ds(k0, tk)]
            _step(fq, fk, out_ref, acc_ref)
    else:
        def kernel(fq_ref, fk_ref, out_ref, acc_ref):
            _step(fq_ref[...], fk_ref[...], out_ref, acc_ref)

    return kernel


# ---------------------------------------------------------------------------
# Wrapper.
# ---------------------------------------------------------------------------

def affinity_pair_loss(fea1, fea2):
    """Mean L1 between batch-softmaxed affinity matrices of one feature pair."""
    assert fea1.shape == fea2.shape
    b, c, h, w = fea1.shape
    hw = h * w
    hwp = ((hw + 127) // 128) * 128          # pad spatial axis to a 128 multiple

    f1 = fea1.reshape(b, c, hw).astype(jnp.float32)
    f2 = fea2.reshape(b, c, hw).astype(jnp.float32)
    slab = jnp.concatenate([f1, f2], axis=0)             # (2B, C, HW)

    channels_last = c >= 128
    if channels_last:
        # Contract over the lane-resident C dim -> no per-tile XLU relayout.
        slab = jnp.transpose(slab, (0, 2, 1))            # (2B, HW, C)
        if hwp != hw:
            slab = jnp.pad(slab, [(0, 0), (0, hwp - hw), (0, 0)])
    else:
        c_pad = max(8, ((c + 7) // 8) * 8)               # clean MXU contraction dim
        slab = jnp.pad(slab, [(0, 0), (0, c_pad - c), (0, hwp - hw)])
    # Zero-padded spatial / channel entries contribute exactly 0 to the loss
    # (gram == 0 for both features -> identical batch-softmax values).

    vmem_cap = _tpu_vmem_capacity()
    limit_cap, tmp_budget, tile_candidates = _budget(vmem_cap)

    tq = tk = 128
    for cand in tile_candidates:
        if hwp % cand == 0 and _step_tmp_bytes(b, cand, cand) <= tmp_budget:
            tq = tk = cand
            break
    if hwp // tq < 2 and tq >= 256:
        tq //= 2          # give the v7x second TensorCore work on the parallel axis
    nq, nk = hwp // tq, hwp // tk

    slab_bytes = int(slab.size) * 4
    col_bytes = slab_bytes // hwp
    resident = (2 * slab_bytes + _step_tmp_bytes(b, tq, tk) + (8 << 20)) <= limit_cap

    kernel = _make_kernel(b, tq, tk, channels_last, resident)

    if resident:
        in_specs = [pl.BlockSpec(tuple(slab.shape), lambda q, k: (0, 0, 0))]
        operands = (slab,)
        in_bytes = 2 * slab_bytes
    else:
        if channels_last:
            q_spec = pl.BlockSpec((slab.shape[0], tq, slab.shape[2]),
                                  lambda q, k: (0, q, 0))
            k_spec = pl.BlockSpec((slab.shape[0], tk, slab.shape[2]),
                                  lambda q, k: (0, k, 0))
        else:
            q_spec = pl.BlockSpec((slab.shape[0], slab.shape[1], tq),
                                  lambda q, k: (0, 0, q))
            k_spec = pl.BlockSpec((slab.shape[0], slab.shape[1], tk),
                                  lambda q, k: (0, 0, k))
        in_specs = [q_spec, k_spec]
        operands = (slab, slab)
        in_bytes = 2 * col_bytes * (tq + tk)             # double-buffered tiles

    out_bytes = 3 * (8 * tk * 4)                         # out block (x2) + acc scratch
    need = in_bytes + out_bytes + _step_tmp_bytes(b, tq, tk) + (4 << 20)
    vmem_limit = int(min(max(need, 32 << 20), limit_cap))

    partials = pl.pallas_call(
        kernel,
        out_shape=jax.ShapeDtypeStruct((nq, 8, tk), jnp.float32),
        grid_spec=pltpu.PrefetchScalarGridSpec(
            num_scalar_prefetch=0,
            grid=(nq, nk),
            in_specs=in_specs,
            out_specs=pl.BlockSpec((1, 8, tk), lambda q, k: (q, 0, 0)),
            scratch_shapes=[pltpu.VMEM((8, tk), jnp.float32)],
        ),
        compiler_params=pltpu.CompilerParams(
            dimension_semantics=("parallel", "arbitrary"),
            vmem_limit_bytes=vmem_limit,
        ),
    )(*operands)

    total = float(b) * float(hw) * float(hw)             # count for the 'mean'
    return jnp.sum(partials) / total


def affinity_loss(fea_list1, fea_list2):
    """JAX/Pallas equivalent of AffinityLoss.forward."""
    if len(fea_list1) != len(fea_list2):
        raise Exception("The length of two lists must be equal.")
    losses = [affinity_pair_loss(f1, f2) for f1, f2 in zip(fea_list1, fea_list2)]
    return sum(losses) / len(losses)


# ---------------------------------------------------------------------------
# Pure-JAX reference (mirrors the PyTorch module, incl. softmax dim=0).
# ---------------------------------------------------------------------------

def _reference_loss(fea_list1, fea_list2):
    losses = []
    for fea1, fea2 in zip(fea_list1, fea_list2):
        b, c, h, w = fea1.shape
        f1 = fea1.reshape(b, c, h * w).astype(jnp.float32)
        f2 = fea2.reshape(b, c, h * w).astype(jnp.float32)
        hi = jax.lax.Precision.HIGHEST
        g1 = jnp.einsum("bci,bcj->bij", f1, f1, precision=hi)
        g2 = jnp.einsum("bci,bcj->bij", f2, f2, precision=hi)
        a1 = jax.nn.softmax(g1, axis=0)      # torch implicit dim for 3-D = 0
        a2 = jax.nn.softmax(g2, axis=0)
        losses.append(jnp.mean(jnp.abs(a1 - a2)))
    return sum(losses) / len(losses)


if __name__ == "__main__":
    key = jax.random.PRNGKey(0)
    keys = jax.random.split(key, 8)

    # Four NCHW feature pairs exercising: multi-tile grid with k-accumulation
    # and a parallel q axis (32x32 -> HW=1024), ragged-HW zero padding
    # (12x12 -> 144 -> 256), the small base case (16x16), and the C>=128
    # channels-last layout path (C=128, 8x8).
    fea_list1 = [
        jax.random.normal(keys[0], (2, 4, 16, 16), jnp.float32),
        jax.random.normal(keys[1], (2, 4, 12, 12), jnp.float32),
        jax.random.normal(keys[2], (2, 4, 32, 32), jnp.float32),
        jax.random.normal(keys[3], (2, 128, 8, 8), jnp.float32),
    ]
    fea_list2 = [
        jax.random.normal(keys[4], (2, 4, 16, 16), jnp.float32),
        jax.random.normal(keys[5], (2, 4, 12, 12), jnp.float32),
        jax.random.normal(keys[6], (2, 4, 32, 32), jnp.float32),
        jax.random.normal(keys[7], (2, 128, 8, 8), jnp.float32),
    ]

    loss = jax.block_until_ready(affinity_loss(fea_list1, fea_list2))
    ref = jax.block_until_ready(_reference_loss(fea_list1, fea_list2))
    assert abs(float(loss) - float(ref)) < 2e-3, (float(loss), float(ref))

    print("KERNEL_OK")
</pallas_src>

<mosaic_0001>
module attributes {stable_mosaic.version = 11 : i64} {
  func.func @kernel(%arg0: i32, %arg1: i32, %arg2: memref<4x8x256xf32, #tpu.memory_space<vmem>>, %arg3: memref<1x8x256xf32, #tpu.memory_space<vmem>>, %arg4: memref<8x256xf32, #tpu.memory_space<vmem>>) attributes {dimension_semantics = [#tpu.dimension_semantics<parallel>, #tpu.dimension_semantics<arbitrary>], iteration_bounds = array<i64: 2, 1>, scalar_prefetch = 0 : i64, scratch_operands = 1 : i64, tpu.core_type = #tpu.core_type<tc>, window_params = [{pipeline_mode = #tpu.pipeline_mode<synchronous>, transform_indices = @transform_0, window_bounds = array<i64: 4, 8, 256>}, {transform_indices = @transform_1, window_bounds = array<i64: 1, 8, 256>}]} {
    %c128_i32 = arith.constant 128 : i32
    %0 = arith.muli %arg0, %c128_i32 : i32
    %1 = tpu.assume_multiple %0, 128 : i32
    %c256_i32 = arith.constant 256 : i32
    %2 = arith.muli %arg1, %c256_i32 : i32
    %3 = tpu.assume_multiple %2, 128 : i32
    %c0 = arith.constant 0 : index
    %c0_0 = arith.constant 0 : index
    %4 = arith.index_cast %1 : i32 to index
    %5 = vector.load %arg2[%c0, %c0_0, %4] : memref<4x8x256xf32, #tpu.memory_space<vmem>>, vector<4x8x128xf32>
    %c0_1 = arith.constant 0 : index
    %c0_2 = arith.constant 0 : index
    %6 = arith.index_cast %3 : i32 to index
    %7 = vector.load %arg2[%c0_1, %c0_2, %6] : memref<4x8x256xf32, #tpu.memory_space<vmem>>, vector<4x8x256xf32>
    %c0_i32 = arith.constant 0 : i32
    %8 = arith.cmpi eq, %arg1, %c0_i32 : i32
    %9 = arith.extui %8 : i1 to i32
    %c0_i32_3 = arith.constant 0 : i32
    %10 = arith.cmpi ne, %9, %c0_i32_3 : i32
    scf.if %10 {
      %cst_18 = arith.constant 0.000000e+00 : f32
      %47 = vector.broadcast %cst_18 : f32 to vector<8x256xf32>
      %c0_19 = arith.constant 0 : index
      %c0_20 = arith.constant 0 : index
      %48 = vector.load %arg4[%c0_19, %c0_20] : memref<8x256xf32, #tpu.memory_space<vmem>>, vector<8x256xf32>
      tpu.vector_store %arg4[%c0_19, %c0_20], %47 {strides = array<i32>} : memref<8x256xf32, #tpu.memory_space<vmem>>, vector<8x256xf32>,
    } else {
    }
    "tpu.trace_start"() <{level = 10 : i32, message = "bcq,bck->bqk"}> : () -> ()
    %cst = arith.constant dense<0.000000e+00> : vector<4x128x256xf32>
    %11 = tpu.matmul %5, %7, %cst {dimension_numbers = #tpu.dot_dimension_numbers<[1], [1], [2], [2], [0, 0, 0, 2, 1, 2], [0], [0]>} : vector<4x8x128xf32>, vector<4x8x256xf32>, vector<4x128x256xf32> -> vector<4x128x256xf32>
    "tpu.trace_stop"() : () -> ()
    %12 = vector.extract_strided_slice %11 {offsets = [0, 0, 0], sizes = [2, 128, 256], strides = [1, 1, 1]} : vector<4x128x256xf32> to vector<2x128x256xf32>
    %13 = vector.extract_strided_slice %11 {offsets = [2, 0, 0], sizes = [2, 128, 256], strides = [1, 1, 1]} : vector<4x128x256xf32> to vector<2x128x256xf32>
    %cst_4 = arith.constant dense<0xFF800000> : vector<128x256xf32>
    %14 = vector.multi_reduction <maximumf>, %12, %cst_4 [0] : vector<2x128x256xf32> to vector<128x256xf32>
    %15 = vector.shape_cast %14 : vector<128x256xf32> to vector<1x128x256xf32>
    %16 = vector.broadcast %15 : vector<1x128x256xf32> to vector<2x128x256xf32>
    %17 = arith.subf %12, %16 : vector<2x128x256xf32>
    %18 = math.exp %17 : vector<2x128x256xf32>
    %cst_5 = arith.constant dense<0xFF800000> : vector<128x256xf32>
    %19 = vector.multi_reduction <maximumf>, %13, %cst_5 [0] : vector<2x128x256xf32> to vector<128x256xf32>
    %20 = vector.shape_cast %19 : vector<128x256xf32> to vector<1x128x256xf32>
    %21 = vector.broadcast %20 : vector<1x128x256xf32> to vector<2x128x256xf32>
    %22 = arith.subf %13, %21 : vector<2x128x256xf32>
    %23 = math.exp %22 : vector<2x128x256xf32>
    %cst_6 = arith.constant dense<0.000000e+00> : vector<128x256xf32>
    %24 = vector.multi_reduction <add>, %18, %cst_6 [0] : vector<2x128x256xf32> to vector<128x256xf32>
    %25 = vector.shape_cast %24 : vector<128x256xf32> to vector<1x128x256xf32>
    %cst_7 = arith.constant 1.000000e+00 : f32
    %26 = vector.broadcast %cst_7 : f32 to vector<1x128x256xf32>
    %27 = arith.divf %26, %25 : vector<1x128x256xf32>
    %cst_8 = arith.constant dense<0.000000e+00> : vector<128x256xf32>
    %28 = vector.multi_reduction <add>, %23, %cst_8 [0] : vector<2x128x256xf32> to vector<128x256xf32>
    %29 = vector.shape_cast %28 : vector<128x256xf32> to vector<1x128x256xf32>
    %cst_9 = arith.constant 1.000000e+00 : f32
    %30 = vector.broadcast %cst_9 : f32 to vector<1x128x256xf32>
    %31 = arith.divf %30, %29 : vector<1x128x256xf32>
    %32 = vector.broadcast %27 : vector<1x128x256xf32> to vector<2x128x256xf32>
    %33 = arith.mulf %18, %32 : vector<2x128x256xf32>
    %34 = vector.broadcast %31 : vector<1x128x256xf32> to vector<2x128x256xf32>
    %35 = arith.mulf %23, %34 : vector<2x128x256xf32>
    %36 = arith.subf %33, %35 : vector<2x128x256xf32>
    %37 = math.absf %36 : vector<2x128x256xf32>
    %cst_10 = arith.constant dense<0.000000e+00> : vector<128x256xf32>
    %38 = vector.multi_reduction <add>, %37, %cst_10 [0] : vector<2x128x256xf32> to vector<128x256xf32>
    %39 = vector.shape_cast %38 : vector<128x256xf32> to vector<16x8x256xf32>
    %cst_11 = arith.constant dense<0.000000e+00> : vector<8x256xf32>
    %40 = vector.multi_reduction <add>, %39, %cst_11 [0] : vector<16x8x256xf32> to vector<8x256xf32>
    %c0_12 = arith.constant 0 : index
    %c0_13 = arith.constant 0 : index
    %41 = vector.load %arg4[%c0_12, %c0_13] : memref<8x256xf32, #tpu.memory_space<vmem>>, vector<8x256xf32>
    %42 = arith.addf %41, %40 : vector<8x256xf32>
    %c0_14 = arith.constant 0 : index
    %c0_15 = arith.constant 0 : index
    %43 = vector.load %arg4[%c0_14, %c0_15] : memref<8x256xf32, #tpu.memory_space<vmem>>, vector<8x256xf32>
    tpu.vector_store %arg4[%c0_14, %c0_15], %42 {strides = array<i32>} : memref<8x256xf32, #tpu.memory_space<vmem>>, vector<8x256xf32>,
    %c0_i32_16 = arith.constant 0 : i32
    %44 = arith.cmpi eq, %arg1, %c0_i32_16 : i32
    %45 = arith.extui %44 : i1 to i32
    %c0_i32_17 = arith.constant 0 : i32
    %46 = arith.cmpi ne, %45, %c0_i32_17 : i32
    scf.if %46 {
      %c0_18 = arith.constant 0 : index
      %c0_19 = arith.constant 0 : index
      %47 = vector.load %arg4[%c0_18, %c0_19] : memref<8x256xf32, #tpu.memory_space<vmem>>, vector<8x256xf32>
      %48 = vector.shape_cast %47 : vector<8x256xf32> to vector<1x8x256xf32>
      %c0_20 = arith.constant 0 : index
      %c0_21 = arith.constant 0 : index
      %c0_22 = arith.constant 0 : index
      %49 = vector.load %arg3[%c0_20, %c0_21, %c0_22] : memref<1x8x256xf32, #tpu.memory_space<vmem>>, vector<1x8x256xf32>
      tpu.vector_store %arg3[%c0_20, %c0_21, %c0_22], %48 {strides = array<i32>} : memref<1x8x256xf32, #tpu.memory_space<vmem>>, vector<1x8x256xf32>,
    } else {
    }
    return
  }
  func.func @transform_0(%arg0: i32, %arg1: i32) -> (i32, i32, i32) {
    %c0_i32 = arith.constant 0 : i32
    %c0_i32_0 = arith.constant 0 : i32
    %c0_i32_1 = arith.constant 0 : i32
    %c0_i32_2 = arith.constant 0 : i32
    return %c0_i32, %c0_i32_0, %c0_i32_1 : i32, i32, i32
  }
  func.func @transform_1(%arg0: i32, %arg1: i32) -> (i32, i32, i32) {
    %c0_i32 = arith.constant 0 : i32
    %c0_i32_0 = arith.constant 0 : i32
    %c0_i32_1 = arith.constant 0 : i32
    return %arg0, %c0_i32, %c0_i32_0 : i32, i32, i32
  }
}

</mosaic_0001>

<bundles_post_ra>
// kernel: tpu_custom_call.1
= control target key start
LH: loop header
LB: loop body
LE: loop exit
PB: predicated region body
PF: predicated region fallthrough
CT: control target
= control target key end

     0   :  { %6 = vsyncpa [#allocation4], 0  ;;  %s4447_s0 = inlined_call_operand.hbm [shape: f32[4,8,256], index: 0, kind: input, shape index: {}]   ;;  %s4448_s1 = inlined_call_operand.hbm [shape: f32[2,8,256], index: 1, kind: output, shape index: {}]  }
   0x1   :  { %7 = vsyncpa [#allocation5], 0 }
   0x2   :  { %9 = vsyncpa [#allocation5 + $0x1], 0  ;;  %s2831_s6 = smov 0   ;;  %s2833_s7 = smov 0  }
   0x3   :  { %s2835_s8 = smov 0   ;;  %s2837_s9 = smov 0  }
   0x4   :  { %s2839_s10 = smov 0   ;;  %s2841_s11 = smov 0  }
   0x5 LB: > { %s2172_s12 = sadd.s32 4294967295, %s2814_s11   ;;  %s2173_s13 = sadd.s32 4294967294, %s2814_s11   ;;  %s2814_s11 = sphi %s2841_s11, %s15_s11   ;;  %s2810_s10 = sphi %s2839_s10, %s4650_s10   ;;  %s2806_s9 = sphi %s2837_s9, %s4649_s9   ;;  %s2802_s8 = sphi %s2835_s8, %s4648_s8   ;;  %s2798_s7 = sphi %s2833_s7, %s4647_s7   ;;  %s2794_s6 = sphi %s2831_s6, %s4646_s6  }
   0x6   : > { %s27_s14 = sadd.s32 1, %s2810_s10  ;;  %s55_s15 = sadd.s32 1, %s2802_s8 }
   0x7   : > { %p29_p0 = scmp.ge.s32.totalorder %s27_s14, 2  ;;  %p65_p1 = scmp.ne.s32.totalorder %s2802_s8, %s2798_s7 }
   0x8   : > { %p66_p2 = scmp.eq.s32.totalorder %s2172_s12, 1  ;;  %p71_p3 = scmp.ne.s32.totalorder %s2798_s7, %s2794_s6 }
   0x9   : > { %s4652_s14 = smov (%p29_p0, %s27_s14), 0  ;;  %p72_p5 = scmp.eq.s32.totalorder %s2173_s13, 1 }
   0xa   : > { %p2871_p4 = por %p66_p2, %p65_p1  ;;  %s52_s17 = ssub.s32 %s2810_s10, %s4652_s14 }
   0xb   : > { %p2174_p6 = scmp.ge.s32.totalorder %s2814_s11, 1  ;;  %p53_p7 = scmp.eq.s32.totalorder %s52_s17, 0 }
   0xc   : > { %s4475_s16 = scalar_select %p2871_p4, 1, 0 }
   0xd   : > { %p2878_p8 = por %p72_p5, %p71_p3  ;;  %p79_p9 = scmp.lt.s32.totalorder %s2814_s11, 3 }
   0xe   : > { %s2884_s19 = scalar_select %p53_p7, %s2802_s8, %s55_s15  }
   0xf   : > { %s4476_s18 = scalar_select %p2878_p8, 1, 0 }
  0x10   : > { %p2886_p10 = pnand %p2174_p6, %p79_p9  ;;  %p2890_p11 = scmp.eq.s32.totalorder %s2172_s12, 0 }
  0x11   : > { %s2816_s22 = smov [#allocation3]   ;;  %s2704_s27 = scalar_lea.hbm %s4447_s0, 1024 }
  0x12   : > { %s4477_s20 = scalar_select %p2886_p10, 1, 0 }
  0x13   : > { %s4478_s21 = scalar_select %p2890_p11, 1, 0 }
  0x14   : > { %p2257_p12 = pneg %p2886_p10  ;;  %s91_s23 = sshll.u32 %s2816_s22, 4  ;;  %s92_s23 = int_to_ptr.vmem [resolvable:$true] %s91_s23 }
  0x15   : > { %p2705_p0 = scmp.ne.s32.totalorder %s4447_s0, %s2704_s27  ;;  %p2711_p5 = scmp.lt.u32.totalorder %s2704_s27, %s4447_s0 }
  0x16   : > { %p2898_p13 = pnand %p2890_p11, %p2257_p12 }
  0x18   : > { %p2706_p1 = pneg %p2898_p13 }
  0x1a   : > { %p2707_p2 = pnand %p2706_p1, %p2705_p0 }
  0x1c   : > { %p2708_p3 = pneg %p2707_p2 }
  0x1e   : > { %p2713_p6 = pnand %p2711_p5, %p2708_p3 }
  0x20   : > { %2716 = shalt.err (!%p2713_p6)
}
  0x21   : > { %s2717_s3 = scalar_lea.vmem %s92_s23, 1024  ;;  %p2725_p8 = scmp.lt.s32.totalorder %s92_s23, %s92_s23 }
  0x22   : > { %p2718_p7 = scmp.ne.s32.totalorder %s92_s23, %s2717_s3  ;;  %p2726_p4 = scmp.lt.s32.totalorder %s2717_s3, %s2717_s3 }
  0x24   : > { %p2720_p9 = pnand %p2718_p7, %p2706_p1  ;;  %p2727_p11 = por %p2726_p4, %p2725_p8 }
  0x26   : > { %p2721_p12 = pneg %p2720_p9 }
  0x28   : > { %p2728_p10 = pnand %p2727_p11, %p2721_p12 }
  0x2a   : > { %2731 = shalt.err (!%p2728_p10)
}
  0x2b   : > { %s2817_s4 = smov 256   ;;  %s2818_s5 = smov 16  }
  0x2c   : > { %2260 = dma.hbm_to_vmem [thread:$0]  (!%p2898_p13), %s4447_s0, 1024, %s92_s23, [#allocation4], %s2817_s4, %s2817_s4, %s2818_s5  }
  0x2d   : > { %p4480_p0 = scmp.ne.s32.totalorder %s4477_s20, 0 }
  0x2f   : > { %107 = sbr.rel (%p4480_p0) target bundleno = 735 (0x2df), region = 24 }
  0x36   : > { %p4481_p2 = scmp.ne.s32.totalorder %s4478_s21, 0 }
  0x38   : > { %2785 = dma.done.wait (%p4481_p2), [#allocation4], 1024  }
  0x39   : > { %2787 = vsyncadd (%p4481_p2), [#allocation4], 4294966272  ;;  %s2179_s15 = sshll.u32 %s2806_s9, 7  ;;  %v2819_v0 = vmov 0.0   ;;  %v137_v3 = vld [vmem:[#allocation3 + $0x8] sm:$0xff]  ;;  %v136_v4 = vld [vmem:[#allocation3] sm:$0xff] }
  0x3a   : > { %s124_s17 = sshra.s32 %s2179_s15, 7  ;;  %295 = vmatprep.mubr.f32.mxu0 %v2819_v0  ;;  %536 = vmatprep.mubr.f32.mxu1 %v2819_v0  ;;  %v139_v7 = vld [vmem:[#allocation3 + $0x18] sm:$0xff]  ;;  %v138_v8 = vld [vmem:[#allocation3 + $0x10] sm:$0xff]  ;;  %v141_v9 = vld [vmem:[#allocation3 + $0x28] sm:$0xff]  ;;  %vm182_vm0 = vcmask 64512   ;;  %s119_s20 = sand.u32 1, %s2798_s7  }
  0x3b   : > { %s2180_s22 = sshll.u32 %s124_s17, 3  ;;  %231 = vmatprep.subr.mxu0 %v137_v3  ;;  %472 = vmatprep.subr.mxu1 %v139_v7  ;;  %v143_v10 = vld [vmem:[#allocation3 + $0x38] sm:$0xff]  ;;  %v140_v11 = vld [vmem:[#allocation3 + $0x20] sm:$0xff]  ;;  %v142_v39 = vld [vmem:[#allocation3 + $0x30] sm:$0xff]  ;;  %s2178_s21 = sshll.u32 %s119_s20, 4 }
  0x3c   : > { %s127_s24 = scalar_lea.vmem [#allocation3], %s2180_s22  ;;  %232 = vmatpush1.msra.mxu0 %v136_v4  ;;  %473 = vmatpush1.msra.mxu1 %v138_v8  ;;  %s2250_s23 = sshll.u32 %s2806_s9, 8 }
  0x3d   : > { %v128_v1 = vld [vmem:[%s127_s24] sm:$0xff]  ;;  %v129_v5 = vld [vmem:[%s127_s24 + $0x10] sm:$0xff]  ;;  %713 = vmatprep.subr.mxu0 %v141_v9  ;;  %954 = vmatprep.subr.mxu1 %v143_v10  ;;  %s121_s25 = scalar_lea.vmem [#allocation6], %s2178_s21  ;;  %s4400_s29 = scalar_lea.hbm %s4448_s1, %s2250_s23 }
  0x3e   : > { %v130_v2 = vld [vmem:[%s127_s24 + $0x20] sm:$0xff]  ;;  %150 = vxpose.xlu0.b32.start.end [1/1] (short) %v128_v1, 128  ;;  %v131_v6 = vld [vmem:[%s127_s24 + $0x30] sm:$0xff]  ;;  %s2101_s26 = sshll.u32 %s121_s25, 4  ;;  %s2087_s30 = scalar_lea.sflag [#allocation5], %s119_s20  ;;  %s4402_s26 = int_to_ptr.vmem [resolvable:$true] %s2101_s26 }
  0x3f   : > { %633 = vxpose.xlu1.b32.start.end [1/1] (short) %v130_v2, 128  ;;  %s2732_s2 = scalar_lea.vmem %s4402_s26, 256  ;;  %p4644_p8 = scmp.ne.s32.totalorder %s4475_s16, 0 }
  0x40   : > { %p2733_p4 = scmp.ne.s32.totalorder %s4402_s26, %s2732_s2  ;;  %s2820_s9 = smov [#allocation6]  }
  0x41   : > { %s2736_s3 = sshll.u32 %s2820_s9, 4  ;;  %s2737_s3 = int_to_ptr.vmem [resolvable:$false] %s2736_s3 }
  0x42   : > { %p2734_p10 = pnand %p2733_p4, %p4644_p8  ;;  %s2738_s4 = scalar_lea.vmem %s2737_s3, 512 }
  0x43   : > { %p2739_p13 = scmp.lt.s32.totalorder %s4402_s26, %s2737_s3  ;;  %p2740_p1 = scmp.lt.s32.totalorder %s2738_s4, %s2732_s2 }
  0x44   : > { %p2735_p11 = pneg %p2734_p10 }
  0x45   : > { %p2741_p3 = por %p2740_p1, %p2739_p13 }
  0x47   : > { %p2742_p5 = pnand %p2741_p3, %p2735_p11 }
  0x7b   : > { %392 = vxpose.xlu0.b32.start.end [1/1] (short) %v129_v5, 128 }
  0x7c   : > { %874 = vxpose.xlu1.b32.start.end [1/1] (short) %v131_v6, 128 }
  0xbe   : > { %v166_v12 = vpop.trf.xlu0 }
  0xbf   : > { %v649_v13 = vpop.trf.xlu1  ;;  %2181 = vmatmul.mubr.msk.f32.vlgmr.msra.gmra.mrb[0].mxu0 %vm182_vm0, %v166_v12 }
  0xc0   : > { %301 = vmatprep.mubr.f32.mxu0 %v2819_v0  ;;  %714 = vmatpush1.msra.mxu0 %v140_v11 }
  0xc2   : > { %v167_v14 = vpop.trf.xlu0 }
  0xc3   : > { %2182 = vmatmul.mubr.msk.f32.gmra.mrb[2].mxu0 %vm182_vm0, %v167_v14  ;;  %v650_v15 = vpop.trf.xlu1 }
  0xc4   : > { %307 = vmatprep.mubr.f32.mxu0 %v2819_v0 }
  0xc6   : > { %v168_v16 = vpop.trf.xlu0 }
  0xc7   : > { %2183 = vmatmul.mubr.msk.f32.gmra.mrb[4].mxu0 %vm182_vm0, %v168_v16  ;;  %v2933_v18 = vpop.trf.xlu1 }
  0xc8   : > { %313 = vmatprep.mubr.f32.mxu0 %v2819_v0 }
  0xca   : > { %v169_v17 = vpop.trf.xlu0 }
  0xcb   : > { %2184 = vmatmul.mubr.msk.f32.gmra.mrb[6].mxu0 %vm182_vm0, %v169_v17  ;;  %v652_v20 = vpop.trf.xlu1 }
  0xcc   : > { %319 = vmatprep.mubr.f32.mxu0 %v2819_v0 }
  0xce   : > { %v170_v19 = vpop.trf.xlu0 }
  0xcf   : > { %2185 = vmatmul.mubr.msk.f32.gmra.mrb[8].mxu0 %vm182_vm0, %v170_v19  ;;  %v2941_v23 = vpop.trf.xlu1 }
  0xd0   : > { %325 = vmatprep.mubr.f32.mxu0 %v2819_v0 }
  0xd2   : > { %v171_v21 = vpop.trf.xlu0 }
  0xd3   : > { %2186 = vmatmul.mubr.msk.f32.gmra.mrb[10].mxu0 %vm182_vm0, %v171_v21  ;;  %v2947_v25 = vpop.trf.xlu1 }
  0xd4   : > { %331 = vmatprep.mubr.f32.mxu0 %v2819_v0 }
  0xd6   : > { %v172_v22 = vpop.trf.xlu0 }
  0xd7   : > { %2187 = vmatmul.mubr.msk.f32.gmra.mrb[12].mxu0 %vm182_vm0, %v172_v22  ;;  %v2951_v28 = vpop.trf.xlu1 }
  0xd8   : > { %337 = vmatprep.mubr.f32.mxu0 %v2819_v0 }
  0xda   : > { %v173_v24 = vpop.trf.xlu0 }
  0xdb   : > { %2188 = vmatmul.mubr.msk.f32.gmra.mrb[14].mxu0 %vm182_vm0, %v173_v24  ;;  %v2957_v30 = vpop.trf.xlu1 }
  0xdc   : > { %343 = vmatprep.mubr.f32.mxu0 %v2819_v0 }
  0xde   : > { %v174_v26 = vpop.trf.xlu0 }
  0xdf   : > { %2189 = vmatmul.mubr.msk.f32.gmra.mrb[16].mxu0 %vm182_vm0, %v174_v26  ;;  %v2961_v33 = vpop.trf.xlu1 }
  0xe0   : > { %349 = vmatprep.mubr.f32.mxu0 %v2819_v0 }
  0xe2   : > { %v175_v27 = vpop.trf.xlu0 }
  0xe3   : > { %2190 = vmatmul.mubr.msk.f32.gmra.mrb[18].mxu0 %vm182_vm0, %v175_v27  ;;  %v2967_v35 = vpop.trf.xlu1 }
  0xe4   : > { %355 = vmatprep.mubr.f32.mxu0 %v2819_v0 }
  0xe6   : > { %v176_v29 = vpop.trf.xlu0 }
  0xe7   : > { %2191 = vmatmul.mubr.msk.f32.gmra.mrb[20].mxu0 %vm182_vm0, %v176_v29  ;;  %v2971_v38 = vpop.trf.xlu1 }
  0xe8   : > { %361 = vmatprep.mubr.f32.mxu0 %v2819_v0 }
  0xea   : > { %v177_v31 = vpop.trf.xlu0 }
  0xeb   : > { %2192 = vmatmul.mubr.msk.f32.gmra.mrb[22].mxu0 %vm182_vm0, %v177_v31  ;;  %v660_v41 = vpop.trf.xlu1 }
  0xec   : > { %367 = vmatprep.mubr.f32.mxu0 %v2819_v0 }
  0xee   : > { %v178_v32 = vpop.trf.xlu0 }
  0xef   : > { %2193 = vmatmul.mubr.msk.f32.gmra.mrb[24].mxu0 %vm182_vm0, %v178_v32  ;;  %v661_v44 = vpop.trf.xlu1 }
  0xf0   : > { %373 = vmatprep.mubr.f32.mxu0 %v2819_v0 }
  0xf2   : > { %v179_v34 = vpop.trf.xlu0 }
  0xf3   : > { %2194 = vmatmul.mubr.msk.f32.gmra.mrb[26].mxu0 %vm182_vm0, %v179_v34  ;;  %v662_v46 = vpop.trf.xlu1 }
  0xf4   : > { %379 = vmatprep.mubr.f32.mxu0 %v2819_v0 }
  0xf6   : > { %v180_v36 = vpop.trf.xlu0 }
  0xf7   : > { %2195 = vmatmul.mubr.msk.f32.gmra.mrb[28].mxu0 %vm182_vm0, %v180_v36  ;;  %v663_v49 = vpop.trf.xlu1 }
  0xf8   : > { %385 = vmatprep.mubr.f32.mxu0 %v2819_v0 }
  0xfa   : > { %v181_v37 = vpop.trf.xlu0 }
  0xfb   : > { %2196 = vmatmul.mubr.msk.f32.gmra.mrb[30].mxu0 %vm182_vm0, %v181_v37  ;;  %v664_v51 = vpop.trf.xlu1 }
  0xfc   : > { %777 = vmatprep.mubr.f32.mxu0 %v2819_v0 }
  0xfe   : > { %v408_v40 = vpop.trf.xlu0 }
  0xff   : > { %2197 = vmatmul.mubr.msk.f32.vlgmr.msra.gmra.mrb[0].mxu1 %vm182_vm0, %v408_v40  ;;  %2213 = vmatmul.mubr.msk.f32.vlgmr.msra.gmra.mrb[32].mxu0 %vm182_vm0, %v649_v13  ;;  %v890_v54 = vpop.trf.xlu1 }
 0x100   : > { %955 = vmatpush1.msra.mxu1 %v142_v39  ;;  %542 = vmatprep.mubr.f32.mxu1 %v2819_v0 }
 0x101   : > { %783 = vmatprep.mubr.f32.mxu0 %v2819_v0 }
 0x102   : > { %v409_v42 = vpop.trf.xlu0 }
 0x103   : > { %2198 = vmatmul.mubr.msk.f32.gmra.mrb[2].mxu1 %vm182_vm0, %v409_v42  ;;  %2214 = vmatmul.mubr.msk.f32.gmra.mrb[34].mxu0 %vm182_vm0, %v650_v15  ;;  %v891_v56 = vpop.trf.xlu1 }
 0x104   : > { %548 = vmatprep.mubr.f32.mxu1 %v2819_v0  ;;  %789 = vmatprep.mubr.f32.mxu0 %v2819_v0 }
 0x106   : > { %v410_v43 = vpop.trf.xlu0 }
 0x107   : > { %2199 = vmatmul.mubr.msk.f32.gmra.mrb[4].mxu1 %vm182_vm0, %v410_v43  ;;  %2215 = vmatmul.mubr.msk.f32.gmra.mrb[36].mxu0 %vm182_vm0, %v2933_v18  ;;  %v892_v59 = vpop.trf.xlu1 }
 0x108   : > { %554 = vmatprep.mubr.f32.mxu1 %v2819_v0  ;;  %795 = vmatprep.mubr.f32.mxu0 %v2819_v0 }
 0x10a   : > { %v411_v45 = vpop.trf.xlu0 }
 0x10b   : > { %2200 = vmatmul.mubr.msk.f32.gmra.mrb[6].mxu1 %vm182_vm0, %v411_v45  ;;  %2216 = vmatmul.mubr.msk.f32.gmra.mrb[38].mxu0 %vm182_vm0, %v652_v20  ;;  %v893_v61 = vpop.trf.xlu1 }
 0x10c   : > { %560 = vmatprep.mubr.f32.mxu1 %v2819_v0  ;;  %801 = vmatprep.mubr.f32.mxu0 %v2819_v0 }
 0x10e   : > { %v412_v47 = vpop.trf.xlu0 }
 0x10f   : > { %2201 = vmatmul.mubr.msk.f32.gmra.mrb[8].mxu1 %vm182_vm0, %v412_v47  ;;  %2217 = vmatmul.mubr.msk.f32.gmra.mrb[40].mxu0 %vm182_vm0, %v2941_v23  ;;  %v894_v1 = vpop.trf.xlu1 }
 0x110   : > { %566 = vmatprep.mubr.f32.mxu1 %v2819_v0  ;;  %807 = vmatprep.mubr.f32.mxu0 %v2819_v0 }
 0x112   : > { %v413_v48 = vpop.trf.xlu0 }
 0x113   : > { %2202 = vmatmul.mubr.msk.f32.gmra.mrb[10].mxu1 %vm182_vm0, %v413_v48  ;;  %2218 = vmatmul.mubr.msk.f32.gmra.mrb[42].mxu0 %vm182_vm0, %v2947_v25  ;;  %v895_v3 = vpop.trf.xlu1 }
 0x114   : > { %572 = vmatprep.mubr.f32.mxu1 %v2819_v0  ;;  %813 = vmatprep.mubr.f32.mxu0 %v2819_v0 }
 0x116   : > { %v414_v50 = vpop.trf.xlu0 }
 0x117   : > { %2203 = vmatmul.mubr.msk.f32.gmra.mrb[12].mxu1 %vm182_vm0, %v414_v50  ;;  %2219 = vmatmul.mubr.msk.f32.gmra.mrb[44].mxu0 %vm182_vm0, %v2951_v28  ;;  %v896_v4 = vpop.trf.xlu1 }
 0x118   : > { %578 = vmatprep.mubr.f32.mxu1 %v2819_v0  ;;  %819 = vmatprep.mubr.f32.mxu0 %v2819_v0 }
 0x11a   : > { %v415_v52 = vpop.trf.xlu0 }
 0x11b   : > { %2204 = vmatmul.mubr.msk.f32.gmra.mrb[14].mxu1 %vm182_vm0, %v415_v52  ;;  %2220 = vmatmul.mubr.msk.f32.gmra.mrb[46].mxu0 %vm182_vm0, %v2957_v30  ;;  %v897_v5 = vpop.trf.xlu1 }
 0x11c   : > { %584 = vmatprep.mubr.f32.mxu1 %v2819_v0  ;;  %825 = vmatprep.mubr.f32.mxu0 %v2819_v0 }
 0x11e   : > { %v416_v53 = vpop.trf.xlu0 }
 0x11f   : > { %2205 = vmatmul.mubr.msk.f32.gmra.mrb[16].mxu1 %vm182_vm0, %v416_v53  ;;  %2221 = vmatmul.mubr.msk.f32.gmra.mrb[48].mxu0 %vm182_vm0, %v2961_v33  ;;  %v898_v6 = vpop.trf.xlu1 }
 0x120   : > { %590 = vmatprep.mubr.f32.mxu1 %v2819_v0  ;;  %831 = vmatprep.mubr.f32.mxu0 %v2819_v0 }
 0x122   : > { %v417_v55 = vpop.trf.xlu0 }
 0x123   : > { %2206 = vmatmul.mubr.msk.f32.gmra.mrb[18].mxu1 %vm182_vm0, %v417_v55  ;;  %2222 = vmatmul.mubr.msk.f32.gmra.mrb[50].mxu0 %vm182_vm0, %v2967_v35  ;;  %v899_v7 = vpop.trf.xlu1 }
 0x124   : > { %596 = vmatprep.mubr.f32.mxu1 %v2819_v0  ;;  %837 = vmatprep.mubr.f32.mxu0 %v2819_v0 }
 0x126   : > { %v418_v57 = vpop.trf.xlu0 }
 0x127   : > { %2207 = vmatmul.mubr.msk.f32.gmra.mrb[20].mxu1 %vm182_vm0, %v418_v57  ;;  %2223 = vmatmul.mubr.msk.f32.gmra.mrb[52].mxu0 %vm182_vm0, %v2971_v38  ;;  %v900_v8 = vpop.trf.xlu1 }
 0x128   : > { %602 = vmatprep.mubr.f32.mxu1 %v2819_v0  ;;  %843 = vmatprep.mubr.f32.mxu0 %v2819_v0 }
 0x12a   : > { %v419_v58 = vpop.trf.xlu0 }
 0x12b   : > { %2208 = vmatmul.mubr.msk.f32.gmra.mrb[22].mxu1 %vm182_vm0, %v419_v58  ;;  %2224 = vmatmul.mubr.msk.f32.gmra.mrb[54].mxu0 %vm182_vm0, %v660_v41  ;;  %v901_v9 = vpop.trf.xlu1 }
 0x12c   : > { %608 = vmatprep.mubr.f32.mxu1 %v2819_v0  ;;  %849 = vmatprep.mubr.f32.mxu0 %v2819_v0 }
 0x12e   : > { %v420_v60 = vpop.trf.xlu0 }
 0x12f   : > { %2209 = vmatmul.mubr.msk.f32.gmra.mrb[24].mxu1 %vm182_vm0, %v420_v60  ;;  %2225 = vmatmul.mubr.msk.f32.gmra.mrb[56].mxu0 %vm182_vm0, %v661_v44  ;;  %v902_v10 = vpop.trf.xlu1 }
 0x130   : > { %614 = vmatprep.mubr.f32.mxu1 %v2819_v0  ;;  %855 = vmatprep.mubr.f32.mxu0 %v2819_v0 }
 0x132   : > { %v421_v62 = vpop.trf.xlu0 }
 0x133   : > { %2210 = vmatmul.mubr.msk.f32.gmra.mrb[26].mxu1 %vm182_vm0, %v421_v62  ;;  %2226 = vmatmul.mubr.msk.f32.gmra.mrb[58].mxu0 %vm182_vm0, %v662_v46  ;;  %v903_v11 = vpop.trf.xlu1 }
 0x134   : > { %620 = vmatprep.mubr.f32.mxu1 %v2819_v0  ;;  %861 = vmatprep.mubr.f32.mxu0 %v2819_v0 }
 0x136   : > { %v422_v63 = vpop.trf.xlu0 }
 0x137   : > { %2211 = vmatmul.mubr.msk.f32.gmra.mrb[28].mxu1 %vm182_vm0, %v422_v63  ;;  %2227 = vmatmul.mubr.msk.f32.gmra.mrb[60].mxu0 %vm182_vm0, %v663_v49  ;;  %v904_v12 = vpop.trf.xlu1 }
 0x138   : > { %626 = vmatprep.mubr.f32.mxu1 %v2819_v0  ;;  %867 = vmatprep.mubr.f32.mxu0 %v2819_v0 }
 0x13a   : > { %v423_v2 = vpop.trf.xlu0 }
 0x13b   : > { %2212 = vmatmul.mubr.msk.f32.gmra.mrb[30].mxu1 %vm182_vm0, %v423_v2  ;;  %2228 = vmatmul.mubr.msk.f32.gmra.mrb[62].mxu0 %vm182_vm0, %v664_v51  ;;  %v905_v13 = vpop.trf.xlu1 }
 0x13c   : > { %1018 = vmatprep.mubr.f32.mxu1 %v2819_v0 }
 0x13f   : > { %2229 = vmatmul.mubr.msk.f32.vlgmr.msra.gmra.mrb[32].mxu1 %vm182_vm0, %v890_v54 }
 0x140   : > { %1024 = vmatprep.mubr.f32.mxu1 %v2819_v0 }
 0x143   : > { %2230 = vmatmul.mubr.msk.f32.gmra.mrb[34].mxu1 %vm182_vm0, %v891_v56 }
 0x144   : > { %1030 = vmatprep.mubr.f32.mxu1 %v2819_v0 }
 0x147   : > { %2231 = vmatmul.mubr.msk.f32.gmra.mrb[36].mxu1 %vm182_vm0, %v892_v59 }
 0x148   : > { %1036 = vmatprep.mubr.f32.mxu1 %v2819_v0 }
 0x14b   : > { %2232 = vmatmul.mubr.msk.f32.gmra.mrb[38].mxu1 %vm182_vm0, %v893_v61 }
 0x14c   : > { %1042 = vmatprep.mubr.f32.mxu1 %v2819_v0 }
 0x14f   : > { %2233 = vmatmul.mubr.msk.f32.gmra.mrb[40].mxu1 %vm182_vm0, %v894_v1 }
 0x150   : > { %1048 = vmatprep.mubr.f32.mxu1 %v2819_v0 }
 0x153   : > { %2234 = vmatmul.mubr.msk.f32.gmra.mrb[42].mxu1 %vm182_vm0, %v895_v3 }
 0x154   : > { %1054 = vmatprep.mubr.f32.mxu1 %v2819_v0 }
 0x157   : > { %2235 = vmatmul.mubr.msk.f32.gmra.mrb[44].mxu1 %vm182_vm0, %v896_v4 }
 0x158   : > { %1060 = vmatprep.mubr.f32.mxu1 %v2819_v0 }
 0x15b   : > { %2236 = vmatmul.mubr.msk.f32.gmra.mrb[46].mxu1 %vm182_vm0, %v897_v5 }
 0x15c   : > { %1066 = vmatprep.mubr.f32.mxu1 %v2819_v0 }
 0x15f   : > { %2237 = vmatmul.mubr.msk.f32.gmra.mrb[48].mxu1 %vm182_vm0, %v898_v6 }
 0x160   : > { %1072 = vmatprep.mubr.f32.mxu1 %v2819_v0 }
 0x163   : > { %2238 = vmatmul.mubr.msk.f32.gmra.mrb[50].mxu1 %vm182_vm0, %v899_v7 }
 0x164   : > { %1078 = vmatprep.mubr.f32.mxu1 %v2819_v0 }
 0x167   : > { %2239 = vmatmul.mubr.msk.f32.gmra.mrb[52].mxu1 %vm182_vm0, %v900_v8 }
 0x168   : > { %1084 = vmatprep.mubr.f32.mxu1 %v2819_v0 }
 0x16b   : > { %2240 = vmatmul.mubr.msk.f32.gmra.mrb[54].mxu1 %vm182_vm0, %v901_v9 }
 0x16c   : > { %1090 = vmatprep.mubr.f32.mxu1 %v2819_v0 }
 0x16f   : > { %2241 = vmatmul.mubr.msk.f32.gmra.mrb[56].mxu1 %vm182_vm0, %v902_v10 }
 0x170   : > { %1096 = vmatprep.mubr.f32.mxu1 %v2819_v0 }
 0x173   : > { %2242 = vmatmul.mubr.msk.f32.gmra.mrb[58].mxu1 %vm182_vm0, %v903_v11 }
 0x174   : > { %1102 = vmatprep.mubr.f32.mxu1 %v2819_v0 }
 0x177   : > { %2243 = vmatmul.mubr.msk.f32.gmra.mrb[60].mxu1 %vm182_vm0, %v904_v12 }
 0x178   : > { %1108 = vmatprep.mubr.f32.mxu1 %v2819_v0 }
 0x17b   : > { %2244 = vmatmul.mubr.msk.f32.gmra.mrb[62].mxu1 %vm182_vm0, %v905_v13 }
 0x192   : > { %v297_v14 = vpop.f32.mrb[0].mxu0 }
 0x193   : > { %v299_v15 = vpop.f32.mrb[1].mxu0 }
 0x196   : > { %v303_v16 = vpop.f32.mrb[2].mxu0 }
 0x197   : > { %v3077_v17 = vpop.f32.mrb[3].mxu0 }
 0x19a   : > { %v3079_v18 = vpop.f32.mrb[4].mxu0 }
 0x19b   : > { %v3081_v19 = vpop.f32.mrb[5].mxu0 }
 0x19e   : > { %v3083_v20 = vpop.f32.mrb[6].mxu0 }
 0x19f   : > { %v3085_v21 = vpop.f32.mrb[7].mxu0 }
 0x1a2   : > { %v3087_v22 = vpop.f32.mrb[8].mxu0 }
 0x1a3   : > { %v3089_v23 = vpop.f32.mrb[9].mxu0 }
 0x1a6   : > { %v3091_v0 = vpop.f32.mrb[10].mxu0 }
 0x1a7   : > { %v3093_v24 = vpop.f32.mrb[11].mxu0 }
 0x1aa   : > { %v3095_v25 = vpop.f32.mrb[12].mxu0 }
 0x1ab   : > { %v3097_v26 = vpop.f32.mrb[13].mxu0 }
 0x1ae   : > { %v3099_v27 = vpop.f32.mrb[14].mxu0 }
 0x1af   : > { %v3101_v28 = vpop.f32.mrb[15].mxu0 }
 0x1b2   : > { %v3103_v29 = vpop.f32.mrb[16].mxu0 }
 0x1b3   : > { %v3105_v30 = vpop.f32.mrb[17].mxu0 }
 0x1b6   : > { %v3107_v31 = vpop.f32.mrb[18].mxu0 }
 0x1b7   : > { %v3109_v32 = vpop.f32.mrb[19].mxu0 }
 0x1ba   : > { %v3111_v33 = vpop.f32.mrb[20].mxu0 }
 0x1bb   : > { %v3113_v34 = vpop.f32.mrb[21].mxu0 }
 0x1be   : > { %v3115_v35 = vpop.f32.mrb[22].mxu0 }
 0x1bf   : > { %v3117_v36 = vpop.f32.mrb[23].mxu0 }
 0x1c2   : > { %v3119_v37 = vpop.f32.mrb[24].mxu0 }
 0x1c3   : > { %v3121_v38 = vpop.f32.mrb[25].mxu0 }
 0x1c6   : > { %v3123_v39 = vpop.f32.mrb[26].mxu0 }
 0x1c7   : > { %v3125_v40 = vpop.f32.mrb[27].mxu0 }
 0x1ca   : > { %v3127_v41 = vpop.f32.mrb[28].mxu0 }
 0x1cb   : > { %v3129_v42 = vpop.f32.mrb[29].mxu0 }
 0x1ce   : > { %v3131_v43 = vpop.f32.mrb[30].mxu0 }
 0x1cf   : > { %v3133_v44 = vpop.f32.mrb[31].mxu0 }
 0x1d2   : > { %v538_v45 = vpop.f32.mrb[0].mxu1  ;;  %v3135_v46 = vpop.f32.mrb[32].mxu0 }
 0x1d3   : > { %v1115_v47 = vmax.f32 %v297_v14, %v538_v45  ;;  %v540_v48 = vpop.f32.mrb[1].mxu1  ;;  %v3137_v49 = vpop.f32.mrb[33].mxu0 }
 0x1d4   : > { %v1116_v50 = vmax.f32 %v299_v15, %v540_v48 }
 0x1d5   : > { %v1147_v51 = vsub.f32 %v297_v14, %v1115_v47  ;;  %v1179_v52 = vsub.f32 %v538_v45, %v1115_v47 }
 0x1d6   : > { %v1148_v53 = vsub.f32 %v299_v15, %v1116_v50  ;;  %v1180_v54 = vsub.f32 %v540_v48, %v1116_v50  ;;  %v544_v55 = vpop.f32.mrb[2].mxu1  ;;  %v3139_v56 = vpop.f32.mrb[34].mxu0 }
 0x1d7   : > { %v1211_v57 = vmul.f32 1.442695, %v1147_v51  ;;  %v1275_v58 = vmul.f32 1.442695, %v1179_v52  ;;  %v1117_v59 = vmax.f32 %v303_v16, %v544_v55  ;;  %v546_v60 = vpop.f32.mrb[3].mxu1  ;;  %v3141_v61 = vpop.f32.mrb[35].mxu0 }
 0x1d8   : > { %v1213_v62 = vmul.f32 1.442695, %v1148_v53  ;;  %v1277_v63 = vmul.f32 1.442695, %v1180_v54  ;;  %v1118_v1 = vmax.f32 %v3077_v17, %v546_v60 }
 0x1d9   : > { %2320 = vpow2.f32 %v1211_v57  ;;  %v1149_v2 = vsub.f32 %v303_v16, %v1117_v59  ;;  %v1181_v3 = vsub.f32 %v544_v55, %v1117_v59 }
 0x1da   : > { %2322 = vpow2.f32 %v1275_v58  ;;  %v1150_v4 = vsub.f32 %v3077_v17, %v1118_v1  ;;  %v1182_v5 = vsub.f32 %v546_v60, %v1118_v1  ;;  %v550_v6 = vpop.f32.mrb[4].mxu1  ;;  %v3145_v7 = vpop.f32.mrb[36].mxu0 }
 0x1db   : > { %2324 = vpow2.f32 %v1213_v62  ;;  %v1215_v8 = vmul.f32 1.442695, %v1149_v2  ;;  %v1279_v9 = vmul.f32 1.442695, %v1181_v3  ;;  %v1119_v10 = vmax.f32 %v3079_v18, %v550_v6  ;;  %v552_v11 = vpop.f32.mrb[5].mxu1  ;;  %v3148_v12 = vpop.f32.mrb[37].mxu0 }
 0x1dc   : > { %2326 = vpow2.f32 %v1277_v63  ;;  %v1217_v13 = vmul.f32 1.442695, %v1150_v4  ;;  %v1281_v14 = vmul.f32 1.442695, %v1182_v5  ;;  %v1120_v15 = vmax.f32 %v3081_v19, %v552_v11 }
 0x1dd   : > { %2328 = vpow2.f32 %v1215_v8  ;;  %v1151_v16 = vsub.f32 %v3079_v18, %v1119_v10  ;;  %v1183_v17 = vsub.f32 %v550_v6, %v1119_v10 }
 0x1de   : > { %2330 = vpow2.f32 %v1279_v9  ;;  %v1152_v45 = vsub.f32 %v3081_v19, %v1120_v15  ;;  %v1184_v47 = vsub.f32 %v552_v11, %v1120_v15  ;;  %v556_v48 = vpop.f32.mrb[6].mxu1  ;;  %v3153_v50 = vpop.f32.mrb[38].mxu0 }
 0x1df   : > { %4482 = vst [vmem:[#allocation9_spill] sm:$0xff] %v3153_v50  ;;  %2332 = vpow2.f32 %v1217_v13  ;;  %v1219_v51 = vmul.f32 1.442695, %v1151_v16  ;;  %v1283_v52 = vmul.f32 1.442695, %v1183_v17  ;;  %v1121_v53 = vmax.f32 %v3083_v20, %v556_v48  ;;  %v558_v54 = vpop.f32.mrb[7].mxu1 }
 0x1e0   : > { %v3156_v55 = vpop.f32.mrb[39].mxu0  ;;  %2334 = vpow2.f32 %v1281_v14  ;;  %v1221_v57 = vmul.f32 1.442695, %v1152_v45  ;;  %v1285_v58 = vmul.f32 1.442695, %v1184_v47  ;;  %v1122_v18 = vmax.f32 %v3085_v21, %v558_v54 }
 0x1e1   : > { %4483 = vst [vmem:[#allocation10_spill] sm:$0xff] %v3156_v55  ;;  %2336 = vpow2.f32 %v1219_v51  ;;  %v1153_v19 = vsub.f32 %v3083_v20, %v1121_v53  ;;  %v1185_v59 = vsub.f32 %v556_v48, %v1121_v53 }
 0x1e2   : > { %2338 = vpow2.f32 %v1283_v52  ;;  %v1154_v60 = vsub.f32 %v3085_v21, %v1122_v18  ;;  %v1186_v62 = vsub.f32 %v558_v54, %v1122_v18  ;;  %v562_v63 = vpop.f32.mrb[8].mxu1  ;;  %v3161_v1 = vpop.f32.mrb[40].mxu0 }
 0x1e3   : > { %4484 = vst [vmem:[#allocation11_spill] sm:$0xff] %v3161_v1  ;;  %v3163_v2 = vpop.eup %2320  ;;  %2340 = vpow2.f32 %v1221_v57  ;;  %v1223_v3 = vmul.f32 1.442695, %v1153_v19  ;;  %v1287_v4 = vmul.f32 1.442695, %v1185_v59  ;;  %v1123_v5 = vmax.f32 %v3087_v22, %v562_v63  ;;  %v564_v6 = vpop.f32.mrb[9].mxu1 }
 0x1e4   : > { %v3166_v8 = vpop.f32.mrb[41].mxu0  ;;  %v3168_v9 = vpop.eup %2322  ;;  %2342 = vpow2.f32 %v1285_v58  ;;  %v1225_v20 = vmul.f32 1.442695, %v1154_v60  ;;  %v1124_v21 = vmax.f32 %v3089_v23, %v564_v6  ;;  %v1289_v16 = vmul.f32 1.442695, %v1186_v62 }
 0x1e5   : > { %4485 = vst [vmem:[#allocation12_spill] sm:$0xff] %v3166_v8  ;;  %v3171_v10 = vpop.eup %2324  ;;  %v1563_v11 = vadd.f32 %v3168_v9, %v3163_v2  ;;  %2344 = vpow2.f32 %v1223_v3  ;;  %v1155_v13 = vsub.f32 %v3087_v22, %v1123_v5  ;;  %v1187_v14 = vsub.f32 %v562_v63, %v1123_v5 }
 0x1e6   : > { %v3176_v15 = vpop.eup %2326  ;;  %2346 = vpow2.f32 %v1287_v4  ;;  %v1156_v17 = vsub.f32 %v3089_v23, %v1124_v21  ;;  %v1188_v45 = vsub.f32 %v564_v6, %v1124_v21  ;;  %v568_v47 = vpop.f32.mrb[10].mxu1 }
 0x1e7   : > { %v3179_v48 = vpop.f32.mrb[42].mxu0  ;;  %v3181_v51 = vpop.eup %2328  ;;  %2348 = vrcp.f32 %v1563_v11  ;;  %v1564_v52 = vadd.f32 %v3176_v15, %v3171_v10  ;;  %v1227_v57 = vmul.f32 1.442695, %v1155_v13  ;;  %v1125_v58 = vmax.f32 %v3091_v0, %v568_v47 }
 0x1e8   : > { %4486 = vst [vmem:[#allocation13_spill] sm:$0xff] %v3179_v48  ;;  %v570_v53 = vpop.f32.mrb[11].mxu1  ;;  %v3185_v54 = vpop.f32.mrb[43].mxu0  ;;  %2350 = vpow2.f32 %v1225_v20  ;;  %v1291_v19 = vmul.f32 1.442695, %v1187_v14 }
 0x1e9   : > { %4487 = vst [vmem:[#allocation14_spill] sm:$0xff] %v3185_v54  ;;  %v3187_v22 = vpop.eup %2330  ;;  %2352 = vrcp.f32 %v1564_v52  ;;  %v1126_v59 = vmax.f32 %v3093_v24, %v570_v53  ;;  %v1229_v62 = vmul.f32 1.442695, %v1156_v17  ;;  %v1157_v63 = vsub.f32 %v3091_v0, %v1125_v58 }
 0x1ea   : > { %v3190_v23 = vpop.eup %2332  ;;  %v1565_v18 = vadd.f32 %v3187_v22, %v3181_v51  ;;  %2354 = vpow2.f32 %v1289_v16  ;;  %v1189_v3 = vsub.f32 %v568_v47, %v1125_v58  ;;  %v574_v4 = vpop.f32.mrb[12].mxu1  ;;  %v1293_v0 = vmul.f32 1.442695, %v1188_v45 }
 0x1eb   : > { %v3195_v60 = vpop.eup %2334  ;;  %v3198_v5 = vpop.f32.mrb[44].mxu0  ;;  %v1158_v21 = vsub.f32 %v3093_v24, %v1126_v59  ;;  %v1190_v11 = vsub.f32 %v570_v53, %v1126_v59  ;;  %v1231_v17 = vmul.f32 1.442695, %v1157_v63  ;;  %v1127_v47 = vmax.f32 %v3095_v25, %v574_v4 }
 0x1ec   : > { %4488 = vst [vmem:[#allocation15_spill] sm:$0xff] %v3198_v5  ;;  %v3200_v6 = vpop.eup %2336  ;;  %2356 = vrcp.f32 %v1565_v18  ;;  %v1566_v20 = vadd.f32 %v3195_v60, %v3190_v23  ;;  %v576_v13 = vpop.f32.mrb[13].mxu1  ;;  %v1295_v18 = vmul.f32 1.442695, %v1189_v3 }
 0x1ed   : > { %v3205_v14 = vpop.f32.mrb[45].mxu0  ;;  %v3207_v16 = vpop.eup %2338  ;;  %2358 = vpow2.f32 %v1227_v57  ;;  %v1233_v5 = vmul.f32 1.442695, %v1158_v21  ;;  %v1159_v53 = vsub.f32 %v3095_v25, %v1127_v47  ;;  %v1191_v59 = vsub.f32 %v574_v4, %v1127_v47 }
 0x1ee   : > { %4489 = vst [vmem:[#allocation16_spill] sm:$0xff] %v3205_v14  ;;  %v3210_v52 = vpop.eup %2340  ;;  %2360 = vrcp.f32 %v1566_v20  ;;  %v1567_v58 = vadd.f32 %v3207_v16, %v3200_v6  ;;  %v1128_v57 = vmax.f32 %v3097_v26, %v576_v13  ;;  %v580_v45 = vpop.f32.mrb[14].mxu1  ;;  %v1297_v54 = vmul.f32 1.442695, %v1190_v11 }
 0x1ef   : > { %v3214_v24 = vpop.eup %2342  ;;  %2362 = vpow2.f32 %v1291_v19  ;;  %v3218_v63 = vpop.f32.mrb[46].mxu0  ;;  %v1129_v3 = vmax.f32 %v3099_v27, %v580_v45  ;;  %v1235_v25 = vmul.f32 1.442695, %v1159_v53  ;;  %v1299_v4 = vmul.f32 1.442695, %v1191_v59 }
 0x1f0   : > { %4490 = vst [vmem:[#allocation17_spill] sm:$0xff] %v3218_v63  ;;  %v3220_v14 = vpop.eup %2344  ;;  %2364 = vrcp.f32 %v1567_v58  ;;  %v1568_v20 = vadd.f32 %v3214_v24, %v3210_v52  ;;  %v582_v21 = vpop.f32.mrb[15].mxu1  ;;  %v1160_v47 = vsub.f32 %v3097_v26, %v1128_v57  ;;  %v1192_v8 = vsub.f32 %v576_v13, %v1128_v57 }
 0x1f1   : > { %v3225_v48 = vpop.f32.mrb[47].mxu0  ;;  %v3227_v19 = vpop.eup %2346  ;;  %2366 = vpow2.f32 %v1229_v62  ;;  %v1161_v11 = vsub.f32 %v3099_v27, %v1129_v3  ;;  %v1193_v50 = vsub.f32 %v580_v45, %v1129_v3 }
 0x1f2   : > { %4491 = vst [vmem:[#allocation18_spill] sm:$0xff] %v3225_v48  ;;  %v2349_v63 = vpop.eup %2348  ;;  %2368 = vrcp.f32 %v1568_v20  ;;  %v1569_v58 = vadd.f32 %v3227_v19, %v3220_v14  ;;  %v1237_v62 = vmul.f32 1.442695, %v1160_v47  ;;  %v586_v53 = vpop.f32.mrb[16].mxu1  ;;  %v1301_v20 = vmul.f32 1.442695, %v1192_v8 }
 0x1f3   : > { %v3233_v1 = vpop.eup %2350  ;;  %v3236_v55 = vmul.f32 %v2349_v63, %v3163_v2  ;;  %v3239_v48 = vmul.f32 %v2349_v63, %v3168_v9  ;;  %2370 = vpow2.f32 %v1293_v0  ;;  %v3241_v26 = vpop.f32.mrb[48].mxu0  ;;  %v3243_v13 = vmul.f32 1.442695, %v1161_v11 }
 0x1f4   : > { %v2353_v59 = vpop.eup %2352  ;;  %2372 = vrcp.f32 %v1569_v58  ;;  %v3245_v27 = vpop.f32.mrb[17].mxu1  ;;  %v1130_v63 = vmax.f32 %v3101_v28, %v582_v21  ;;  %v3260_v45 = vmul.f32 1.442695, %v1193_v50  ;;  %v1131_v3 = vmax.f32 %v3103_v29, %v586_v53 }
 0x1f5   : > { %4492 = vst [vmem:[#allocation19_spill] sm:$0xff] %v3239_v48  ;;  %v3247_v57 = vpop.f32.mrb[49].mxu0  ;;  %v3249_v2 = vpop.eup %2354  ;;  %v3252_v9 = vmul.f32 %v2353_v59, %v3171_v10  ;;  %v3255_v0 = vmul.f32 %v2353_v59, %v3176_v15  ;;  %2374 = vpow2.f32 %v1231_v17 }
 0x1f6   : > { %v2357_v47 = vpop.eup %2356  ;;  %v1570_v8 = vadd.f32 %v3249_v2, %v3233_v1  ;;  %2376 = vpow2.f32 %v1295_v18  ;;  %v1162_v17 = vsub.f32 %v3101_v28, %v1130_v63  ;;  %v3272_v11 = vpop.f32.mrb[18].mxu1  ;;  %v1194_v50 = vsub.f32 %v582_v21, %v1130_v63 }
 0x1f7   : > { %4493 = vst [vmem:[#allocation20_spill] sm:$0xff] %v3252_v9  ;;  %4494 = vst [vmem:[#allocation21_spill] sm:$0xff] %v3255_v0  ;;  %v3263_v58 = vpop.eup %2358  ;;  %v3266_v10 = vmul.f32 %v2357_v47, %v3181_v51  ;;  %v3269_v15 = vmul.f32 %v2357_v47, %v3187_v22  ;;  %2378 = vpow2.f32 %v1233_v5  ;;  %v3274_v59 = vpop.f32.mrb[50].mxu0  ;;  %v1163_v0 = vsub.f32 %v3103_v29, %v1131_v3 }
 0x1f8   : > { %v2361_v18 = vpop.eup %2360  ;;  %2380 = vrcp.f32 %v1570_v8  ;;  %v1195_v9 = vsub.f32 %v586_v53, %v1131_v3  ;;  %v3277_v48 = vpop.f32.mrb[19].mxu1  ;;  %v1241_v5 = vmul.f32 1.442695, %v1162_v17  ;;  %v1305_v29 = vmul.f32 1.442695, %v1194_v50 }
 0x1f9   : > { %4495 = vst [vmem:[#allocation22_spill] sm:$0xff] %v3266_v10  ;;  %v3279_v51 = vpop.f32.mrb[51].mxu0  ;;  %v3281_v10 = vpop.eup %2362  ;;  %v3284_v22 = vmul.f32 %v2361_v18, %v3190_v23  ;;  %v3287_v28 = vmul.f32 %v2361_v18, %v3195_v60  ;;  %2382 = vpow2.f32 %v1297_v54  ;;  %v3291_v53 = vmul.f32 1.442695, %v1163_v0 }
 0x1fa   : > { %v2365_v47 = vpop.eup %2364  ;;  %v1571_v21 = vadd.f32 %v3281_v10, %v3263_v58  ;;  %2384 = vpow2.f32 %v1235_v25  ;;  %v3301_v60 = vmul.f32 1.442695, %v1195_v9  ;;  %v3303_v54 = vpop.f32.mrb[20].mxu1  ;;  %v1132_v25 = vmax.f32 %v3105_v30, %v3245_v27 }
 0x1fb   : > { %v3293_v63 = vpop.eup %2366  ;;  %v3296_v8 = vmul.f32 %v2365_v47, %v3200_v6  ;;  %v3299_v23 = vmul.f32 %v2365_v47, %v3207_v16  ;;  %2386 = vpow2.f32 %v1299_v4  ;;  %v3305_v3 = vpop.f32.mrb[52].mxu0  ;;  %v1133_v0 = vmax.f32 %v3107_v31, %v3272_v11 }
 0x1fc   : > { %4498 = vst [vmem:[#allocation25_spill] sm:$0xff] %v3305_v3  ;;  %v2369_v17 = vpop.eup %2368  ;;  %2388 = vrcp.f32 %v1571_v21  ;;  %v1134_v6 = vmax.f32 %v3109_v32, %v3277_v48  ;;  %v3313_v16 = vpop.f32.mrb[21].mxu1  ;;  %v1135_v47 = vmax.f32 %v3111_v33, %v3303_v54 }
 0x1fd   : > { %4496 = vst [vmem:[#allocation23_spill] sm:$0xff] %v3296_v8  ;;  %4497 = vst [vmem:[#allocation24_spill] sm:$0xff] %v3299_v23  ;;  %v3315_v4 = vpop.f32.mrb[53].mxu0  ;;  %v3317_v9 = vpop.eup %2370  ;;  %v3320_v18 = vmul.f32 %v2369_v17, %v3210_v52  ;;  %v3323_v50 = vmul.f32 %v2369_v17, %v3214_v24  ;;  %2390 = vpow2.f32 %v1237_v62  ;;  %v1164_v8 = vsub.f32 %v3105_v30, %v1132_v25 }
 0x1fe   : > { %4499 = vst [vmem:[#allocation26_spill] sm:$0xff] %v3315_v4  ;;  %v2373_v21 = vpop.eup %2372  ;;  %v1572_v23 = vadd.f32 %v3317_v9, %v3293_v63  ;;  %2392 = vpow2.f32 %v1301_v20  ;;  %v1196_v4 = vsub.f32 %v3245_v27, %v1132_v25  ;;  %v1165_v62 = vsub.f32 %v3107_v31, %v1133_v0  ;;  %v3341_v17 = vpop.f32.mrb[22].mxu1 }
 0x1ff   : > { %4500 = vst [vmem:[#allocation27_spill] sm:$0xff] %v3323_v50  ;;  %v3331_v3 = vpop.eup %2374  ;;  %v3334_v52 = vmul.f32 %v2373_v21, %v3220_v14  ;;  %v3337_v24 = vmul.f32 %v2373_v21, %v3227_v19  ;;  %2394 = vpow2.f32 %v3243_v13  ;;  %v3343_v50 = vpop.f32.mrb[54].mxu0  ;;  %v1245_v30 = vmul.f32 1.442695, %v1164_v8 }
 0x200   : > { %4503 = vst [vmem:[#allocation30_spill] sm:$0xff] %v3343_v50  ;;  %v3345_v20 = vpop.eup %2376  ;;  %2396 = vrcp.f32 %v1572_v23  ;;  %v1309_v27 = vmul.f32 1.442695, %v1196_v4  ;;  %v1197_v25 = vsub.f32 %v3272_v11, %v1133_v0  ;;  %v3348_v14 = vpop.f32.mrb[23].mxu1  ;;  %v3357_v13 = vmul.f32 1.442695, %v1165_v62 }
 0x201   : > { %4501 = vst [vmem:[#allocation28_spill] sm:$0xff] %v3334_v52  ;;  %4502 = vst [vmem:[#allocation29_spill] sm:$0xff] %v3337_v24  ;;  %v3350_v52 = vpop.f32.mrb[55].mxu0  ;;  %v3352_v19 = vpop.eup %2378  ;;  %v1573_v31 = vadd.f32 %v3345_v20, %v3331_v3  ;;  %2398 = vpow2.f32 %v3260_v45  ;;  %v1166_v21 = vsub.f32 %v3109_v32, %v1134_v6  ;;  %v1198_v11 = vsub.f32 %v3277_v48, %v1134_v6 }
 0x202   : > { %4504 = vst [vmem:[#allocation31_spill] sm:$0xff] %v3350_v52  ;;  %v2381_v23 = vpop.eup %2380  ;;  %2400 = vpow2.f32 %v1241_v5  ;;  %v3360_v8 = vmul.f32 1.442695, %v1197_v25  ;;  %v1167_v0 = vsub.f32 %v3111_v33, %v1135_v47  ;;  %v3374_v32 = vpop.f32.mrb[24].mxu1 }
 0x203   : > { %v3364_v4 = vpop.eup %2382  ;;  %v3367_v52 = vmul.f32 %v2381_v23, %v3233_v1  ;;  %v3370_v50 = vmul.f32 %v2381_v23, %v3249_v2  ;;  %2402 = vrcp.f32 %v1573_v31  ;;  %v3372_v45 = vmul.f32 1.442695, %v1166_v21  ;;  %v3376_v5 = vpop.f32.mrb[56].mxu0 }
 0x204   : > { %4507 = vst [vmem:[#allocation34_spill] sm:$0xff] %v3376_v5  ;;  %v3378_v62 = vpop.eup %2384  ;;  %v1574_v33 = vadd.f32 %v3364_v4, %v3352_v19  ;;  %2404 = vpow2.f32 %v1305_v29  ;;  %v3382_v48 = vmul.f32 1.442695, %v1198_v11  ;;  %v1199_v1 = vsub.f32 %v3303_v54, %v1135_v47  ;;  %v3385_v6 = vpop.f32.mrb[25].mxu1 }
 0x205   : > { %4505 = vst [vmem:[#allocation32_spill] sm:$0xff] %v3367_v52  ;;  %4506 = vst [vmem:[#allocation33_spill] sm:$0xff] %v3370_v50  ;;  %v3387_v2 = vpop.f32.mrb[57].mxu0  ;;  %v3389_v25 = vpop.eup %2386  ;;  %2406 = vpow2.f32 %v3291_v53  ;;  %v3392_v31 = vmul.f32 1.442695, %v1167_v0  ;;  %v1136_v21 = vmax.f32 %v3113_v34, %v3313_v16  ;;  %v1137_v29 = vmax.f32 %v3115_v35, %v3341_v17 }
 0x206   : > { %4508 = vst [vmem:[#allocation35_spill] sm:$0xff] %v3387_v2  ;;  %v2389_v23 = vpop.eup %2388  ;;  %2408 = vrcp.f32 %v1574_v33  ;;  %v1575_v54 = vadd.f32 %v3389_v25, %v3378_v62  ;;  %v3400_v47 = vmul.f32 1.442695, %v1199_v1  ;;  %v1138_v11 = vmax.f32 %v3117_v36, %v3348_v14  ;;  %v3414_v5 = vpop.f32.mrb[26].mxu1 }
 0x207   : > { %v3404_v2 = vpop.eup %2390  ;;  %v3407_v53 = vmul.f32 %v2389_v23, %v3263_v58  ;;  %v3410_v0 = vmul.f32 %v2389_v23, %v3281_v10  ;;  %2410 = vpow2.f32 %v3301_v60  ;;  %v1168_v33 = vsub.f32 %v3113_v34, %v1136_v21  ;;  %v3416_v50 = vpop.f32.mrb[58].mxu0 }
 0x208   : > { %4511 = vst [vmem:[#allocation38_spill] sm:$0xff] %v3416_v50  ;;  %v3418_v1 = vpop.eup %2392  ;;  %2412 = vrcp.f32 %v1575_v54  ;;  %v1200_v52 = vsub.f32 %v3313_v16, %v1136_v21  ;;  %v1169_v24 = vsub.f32 %v3115_v35, %v1137_v29  ;;  %v1201_v58 = vsub.f32 %v3341_v17, %v1137_v29  ;;  %v3425_v10 = vpop.f32.mrb[59].mxu0 }
 0x209   : > { %4509 = vst [vmem:[#allocation36_spill] sm:$0xff] %v3407_v53  ;;  %4510 = vst [vmem:[#allocation37_spill] sm:$0xff] %v3410_v0  ;;  %v3423_v53 = vpop.f32.mrb[27].mxu1  ;;  %v3427_v60 = vpop.eup %2394  ;;  %v1576_v34 = vadd.f32 %v3418_v1, %v3404_v2  ;;  %2414 = vpow2.f32 %v1245_v30  ;;  %v3431_v23 = vmul.f32 1.442695, %v1168_v33  ;;  %v1170_v54 = vsub.f32 %v3117_v36, %v1138_v11 }
 0x20a   : > { %4512 = vst [vmem:[#allocation39_spill] sm:$0xff] %v3425_v10  ;;  %v2397_v50 = vpop.eup %2396  ;;  %2416 = vpow2.f32 %v1309_v27  ;;  %v3434_v16 = vmul.f32 1.442695, %v1200_v52  ;;  %v3436_v35 = vmul.f32 1.442695, %v1169_v24  ;;  %v1202_v30 = vsub.f32 %v3348_v14, %v1138_v11  ;;  %v3449_v36 = vpop.f32.mrb[28].mxu1 }
 0x20b   : > { %v3438_v17 = vmul.f32 1.442695, %v1201_v58  ;;  %v3440_v21 = vpop.eup %2398  ;;  %v3443_v29 = vmul.f32 %v2397_v50, %v3293_v63  ;;  %v3446_v10 = vmul.f32 %v2397_v50, %v3317_v9  ;;  %2418 = vrcp.f32 %v1576_v34  ;;  %v3451_v27 = vpop.f32.mrb[60].mxu0 }
 0x20c   : > { %4515 = vst [vmem:[#allocation42_spill] sm:$0xff] %v3451_v27  ;;  %v3453_v52 = vpop.eup %2400  ;;  %v1577_v24 = vadd.f32 %v3440_v21, %v3427_v60  ;;  %2420 = vpow2.f32 %v3357_v13  ;;  %v3458_v33 = vmul.f32 1.442695, %v1170_v54  ;;  %v1139_v63 = vmax.f32 %v3119_v37, %v3374_v32  ;;  %v3462_v9 = vpop.f32.mrb[29].mxu1 }
 0x20d   : > { %4513 = vst [vmem:[#allocation40_spill] sm:$0xff] %v3443_v29  ;;  %4514 = vst [vmem:[#allocation41_spill] sm:$0xff] %v3446_v10  ;;  %v3464_v50 = vpop.f32.mrb[61].mxu0  ;;  %v2403_v14 = vpop.eup %2402  ;;  %2422 = vpow2.f32 %v3360_v8  ;;  %v3467_v11 = vmul.f32 1.442695, %v1202_v30  ;;  %v1140_v58 = vmax.f32 %v3121_v38, %v3385_v6  ;;  %v1141_v13 = vmax.f32 %v3123_v39, %v3414_v5 }
 0x20e   : > { %4516 = vst [vmem:[#allocation43_spill] sm:$0xff] %v3464_v50  ;;  %v3473_v34 = vpop.eup %2404  ;;  %v3476_v54 = vmul.f32 %v2403_v14, %v3331_v3  ;;  %v3479_v27 = vmul.f32 %v2403_v14, %v3345_v20  ;;  %2424 = vrcp.f32 %v1577_v24  ;;  %v1171_v50 = vsub.f32 %v3119_v37, %v1139_v63  ;;  %v3489_v0 = vpop.f32.mrb[30].mxu1 }
 0x20f   : > { %v3482_v8 = vpop.eup %2406  ;;  %v1578_v30 = vadd.f32 %v3473_v34, %v3453_v52  ;;  %2426 = vpow2.f32 %v3372_v45  ;;  %v1203_v10 = vsub.f32 %v3374_v32, %v1139_v63  ;;  %v1172_v29 = vsub.f32 %v3121_v38, %v1140_v58  ;;  %v3491_v3 = vpop.f32.mrb[62].mxu0 }
 0x210   : > { %4517 = vst [vmem:[#allocation44_spill] sm:$0xff] %v3476_v54  ;;  %4518 = vst [vmem:[#allocation45_spill] sm:$0xff] %v3479_v27  ;;  %v2409_v20 = vpop.eup %2408  ;;  %2428 = vpow2.f32 %v3382_v48  ;;  %v3494_v24 = vmul.f32 1.442695, %v1171_v50  ;;  %v1204_v37 = vsub.f32 %v3385_v6, %v1140_v58  ;;  %v1173_v14 = vsub.f32 %v3123_v39, %v1141_v13  ;;  %v3498_v27 = vpop.f32.mrb[31].mxu1 }
 0x211   : > { %4519 = vst [vmem:[#allocation46_spill] sm:$0xff] %v3491_v3  ;;  %v3500_v45 = vpop.f32.mrb[63].mxu0  ;;  %v3502_v32 = vpop.eup %2410  ;;  %v3505_v38 = vmul.f32 %v2409_v20, %v3352_v19  ;;  %v3508_v63 = vmul.f32 %v2409_v20, %v3364_v4  ;;  %2430 = vrcp.f32 %v1578_v30  ;;  %v3510_v48 = vmul.f32 1.442695, %v1203_v10 }
 0x212   : > { %4520 = vst [vmem:[#allocation47_spill] sm:$0xff] %v3500_v45  ;;  %v2413_v50 = vpop.eup %2412  ;;  %v1579_v6 = vadd.f32 %v3502_v32, %v3482_v8  ;;  %2432 = vpow2.f32 %v3392_v31  ;;  %v3515_v39 = vmul.f32 1.442695, %v1172_v29  ;;  %v3517_v58 = vmul.f32 1.442695, %v1204_v37  ;;  %v3529_v30 = vpop.f32.mrb[32].mxu1 }
 0x213   : > { %4521 = vst [vmem:[#allocation48_spill] sm:$0xff] %v3505_v38  ;;  %4522 = vst [vmem:[#allocation49_spill] sm:$0xff] %v3508_v63  ;;  %v3519_v45 = vpop.eup %2414  ;;  %v3522_v19 = vmul.f32 %v2413_v50, %v3378_v62  ;;  %v3525_v4 = vmul.f32 %v2413_v50, %v3389_v25  ;;  %2434 = vpow2.f32 %v3400_v47  ;;  %v1205_v10 = vsub.f32 %v3414_v5, %v1141_v13  ;;  %v3539_v37 = vpop.f32.mrb[33].mxu1 }
 0x214   : > { %v3531_v20 = vpop.eup %2416  ;;  %2436 = vrcp.f32 %v1579_v6  ;;  %v3533_v31 = vmul.f32 1.442695, %v1173_v14  ;;  %v1142_v29 = vmax.f32 %v3125_v40, %v3423_v53  ;;  %v1143_v62 = vmax.f32 %v3127_v41, %v3449_v36 }
 0x215   : > { %4523 = vst [vmem:[#allocation50_spill] sm:$0xff] %v3522_v19  ;;  %4524 = vst [vmem:[#allocation51_spill] sm:$0xff] %v3525_v4  ;;  %v2419_v25 = vpop.eup %2418  ;;  %v1580_v47 = vadd.f32 %v3531_v20, %v3519_v45  ;;  %2438 = vpow2.f32 %v3431_v23  ;;  %v3544_v5 = vmul.f32 1.442695, %v1205_v10  ;;  %v1144_v13 = vmax.f32 %v3129_v42, %v3462_v9 }
 0x216   : > { %v3548_v14 = vpop.eup %2420  ;;  %v3551_v50 = vmul.f32 %v2419_v25, %v3404_v2  ;;  %v3554_v6 = vmul.f32 %v2419_v25, %v3418_v1  ;;  %2440 = vpow2.f32 %v3434_v16  ;;  %v1174_v3 = vsub.f32 %v3125_v40, %v1142_v29  ;;  %v3563_v63 = vpop.f32.mrb[34].mxu1 }
 0x217   : > { %v3558_v4 = vpop.eup %2422  ;;  %2442 = vrcp.f32 %v1580_v47  ;;  %v1206_v23 = vsub.f32 %v3423_v53, %v1142_v29  ;;  %v1175_v10 = vsub.f32 %v3127_v41, %v1143_v62  ;;  %v1207_v19 = vsub.f32 %v3449_v36, %v1143_v62  ;;  %v3571_v25 = vpop.f32.mrb[35].mxu1 }
 0x218   : > { %4525 = vst [vmem:[#allocation52_spill] sm:$0xff] %v3551_v50  ;;  %4526 = vst [vmem:[#allocation53_spill] sm:$0xff] %v3554_v6  ;;  %v2425_v2 = vpop.eup %2424  ;;  %v1581_v1 = vadd.f32 %v3558_v4, %v3548_v14  ;;  %2444 = vpow2.f32 %v3436_v35  ;;  %v3568_v16 = vmul.f32 1.442695, %v1174_v3  ;;  %v1176_v40 = vsub.f32 %v3129_v42, %v1144_v13 }
 0x219   : > { %v3573_v47 = vpop.eup %2426  ;;  %v3576_v41 = vmul.f32 %v2425_v2, %v3427_v60  ;;  %v3579_v53 = vmul.f32 %v2425_v2, %v3440_v21  ;;  %2446 = vpow2.f32 %v3438_v17  ;;  %v3582_v36 = vmul.f32 1.442695, %v1206_v23 }
 0x21a   : > { %v3584_v29 = vpop.eup %2428  ;;  %2448 = vrcp.f32 %v1581_v1  ;;  %v3586_v35 = vmul.f32 1.442695, %v1175_v10  ;;  %v3588_v42 = vmul.f32 1.442695, %v1207_v19  ;;  %v1208_v3 = vsub.f32 %v3462_v9, %v1144_v13  ;;  %v3598_v23 = vpop.f32.mrb[36].mxu1 }
 0x21b   : > { %4527 = vst [vmem:[#allocation54_spill] sm:$0xff] %v3576_v41  ;;  %4528 = vst [vmem:[#allocation55_spill] sm:$0xff] %v3579_v53  ;;  %v2431_v62 = vpop.eup %2430  ;;  %v1582_v60 = vadd.f32 %v3584_v29, %v3573_v47  ;;  %2450 = vpow2.f32 %v3458_v33  ;;  %v3594_v21 = vmul.f32 1.442695, %v1176_v40  ;;  %v1145_v17 = vmax.f32 %v3131_v43, %v3489_v0  ;;  %v3611_v33 = vpop.f32.mrb[37].mxu1 }
 0x21c   : > { %v3600_v2 = vpop.eup %2432  ;;  %v3603_v19 = vmul.f32 %v2431_v62, %v3453_v52  ;;  %v3606_v9 = vmul.f32 %v2431_v62, %v3473_v34  ;;  %2452 = vpow2.f32 %v3467_v11  ;;  %v3609_v13 = vmul.f32 1.442695, %v1208_v3 }
 0x21d   : > { %v3613_v10 = vpop.eup %2434  ;;  %2454 = vrcp.f32 %v1582_v60  ;;  %v1177_v1 = vsub.f32 %v3131_v43, %v1145_v17  ;;  %v1209_v40 = vsub.f32 %v3489_v0, %v1145_v17  ;;  %v1146_v52 = vmax.f32 %v3133_v44, %v3498_v27 }
 0x21e   : > { %4529 = vst [vmem:[#allocation56_spill] sm:$0xff] %v3603_v19  ;;  %4530 = vst [vmem:[#allocation57_spill] sm:$0xff] %v3606_v9  ;;  %v2437_v19 = vpop.eup %2436  ;;  %v1583_v34 = vadd.f32 %v3613_v10, %v3600_v2  ;;  %2456 = vpow2.f32 %v3494_v24  ;;  %v1339_v11 = vmax.f32 %v3135_v46, %v3529_v30  ;;  %v1340_v3 = vmax.f32 %v3137_v49, %v3539_v37  ;;  %v3637_v17 = vpop.f32.mrb[38].mxu1 }
 0x21f   : > { %v3626_v62 = vpop.eup %2438  ;;  %v3629_v43 = vmul.f32 %v2437_v19, %v3482_v8  ;;  %v3632_v0 = vmul.f32 %v2437_v19, %v3502_v32  ;;  %2458 = vpow2.f32 %v3510_v48  ;;  %v3635_v60 = vmul.f32 1.442695, %v1177_v1  ;;  %v3645_v8 = vpop.f32.mrb[39].mxu1 }
 0x220   : > { %v3639_v24 = vpop.eup %2440  ;;  %2460 = vrcp.f32 %v1583_v34  ;;  %v3641_v9 = vmul.f32 1.442695, %v1209_v40  ;;  %v1178_v53 = vsub.f32 %v3133_v44, %v1146_v52  ;;  %v1210_v41 = vsub.f32 %v3498_v27, %v1146_v52 }
 0x221   : > { %4531 = vst [vmem:[#allocation58_spill] sm:$0xff] %v3629_v43  ;;  %4532 = vst [vmem:[#allocation59_spill] sm:$0xff] %v3632_v0  ;;  %v2443_v43 = vpop.eup %2442  ;;  %v1584_v32 = vadd.f32 %v3639_v24, %v3626_v62  ;;  %2462 = vpow2.f32 %v3515_v39  ;;  %v1371_v48 = vsub.f32 %v3135_v46, %v1339_v11  ;;  %v1403_v19 = vsub.f32 %v3529_v30, %v1339_v11 }
 0x222   : > { %v3652_v1 = vpop.eup %2444  ;;  %v3655_v40 = vmul.f32 %v2443_v43, %v3519_v45  ;;  %v3658_v44 = vmul.f32 %v2443_v43, %v3531_v20  ;;  %2464 = vpow2.f32 %v3517_v58  ;;  %v3661_v27 = vmul.f32 1.442695, %v1178_v53  ;;  %v3676_v53 = vpop.f32.mrb[40].mxu1 }
 0x223   : > { %v3663_v52 = vpop.eup %2446  ;;  %2466 = vrcp.f32 %v1584_v32  ;;  %v3665_v39 = vmul.f32 1.442695, %v1210_v41  ;;  %v3667_v46 = vmul.f32 1.442695, %v1371_v48  ;;  %v3669_v30 = vmul.f32 1.442695, %v1403_v19 }
 0x224   : > { %4533 = vst [vmem:[#allocation60_spill] sm:$0xff] %v3655_v40  ;;  %4534 = vst [vmem:[#allocation61_spill] sm:$0xff] %v3658_v44  ;;  %v2449_v34 = vpop.eup %2448  ;;  %v1585_v45 = vadd.f32 %v3663_v52, %v3652_v1  ;;  %2468 = vpow2.f32 %v3533_v31  ;;  %v1372_v20 = vsub.f32 %v3137_v49, %v1340_v3  ;;  %v1404_v58 = vsub.f32 %v3539_v37, %v1340_v3  ;;  %v3689_v31 = vpop.f32.mrb[41].mxu1 }
 0x225   : > { %v3678_v11 = vpop.eup %2450  ;;  %v3681_v41 = vmul.f32 %v2449_v34, %v3548_v14  ;;  %v3684_v43 = vmul.f32 %v2449_v34, %v3558_v4  ;;  %2470 = vpow2.f32 %v3544_v5  ;;  %v1341_v32 = vmax.f32 %v3139_v56, %v3563_v63 }
 0x226   : > { %v3691_v49 = vpop.eup %2452  ;;  %2472 = vrcp.f32 %v1585_v45  ;;  %v3693_v37 = vmul.f32 1.442695, %v1372_v20  ;;  %v3695_v3 = vmul.f32 1.442695, %v1404_v58  ;;  %v1342_v14 = vmax.f32 %v3141_v61, %v3571_v25  ;;  %v3704_v34 = vpop.f32.mrb[42].mxu1 }
 0x227   : > { %4535 = vst [vmem:[#allocation62_spill] sm:$0xff] %v3681_v41  ;;  %4536 = vst [vmem:[#allocation63_spill] sm:$0xff] %v3684_v43  ;;  %v2455_v48 = vpop.eup %2454  ;;  %v1586_v4 = vadd.f32 %v3691_v49, %v3678_v11  ;;  %2474 = vpow2.f32 %v3568_v16  ;;  %v1373_v5 = vsub.f32 %v3139_v56, %v1341_v32  ;;  %v1405_v19 = vsub.f32 %v3563_v63, %v1341_v32  ;;  %v3716_v41 = vpop.f32.mrb[43].mxu1 }
 0x228   : > { %v3706_v45 = vpop.eup %2456  ;;  %v3709_v20 = vmul.f32 %v2455_v48, %v3573_v47  ;;  %v3712_v58 = vmul.f32 %v2455_v48, %v3584_v29  ;;  %2476 = vpow2.f32 %v3582_v36  ;;  %v1374_v43 = vsub.f32 %v3141_v61, %v1342_v14 }
 0x229   : > { %v3718_v16 = vpop.eup %2458  ;;  %2478 = vrcp.f32 %v1586_v4  ;;  %v3720_v56 = vmul.f32 1.442695, %v1373_v5  ;;  %v3722_v63 = vmul.f32 1.442695, %v1405_v19  ;;  %v1406_v32 = vsub.f32 %v3571_v25, %v1342_v14 }
 0x22a   : > { %4537 = vst [vmem:[#allocation64_spill] sm:$0xff] %v3709_v20  ;;  %4538 = vst [vmem:[#allocation65_spill] sm:$0xff] %v3712_v58  ;;  %v2461_v47 = vpop.eup %2460  ;;  %v1587_v29 = vadd.f32 %v3718_v16, %v3706_v45  ;;  %2480 = vpow2.f32 %v3586_v35  ;;  %v3728_v36 = vmul.f32 1.442695, %v1374_v43  ;;  %v1343_v61 = vmax.f32 %v3145_v7, %v3598_v23  ;;  %v3743_v14 = vpop.f32.mrb[44].mxu1 }
 0x22b   : > { %v3732_v48 = vpop.eup %2462  ;;  %v3735_v4 = vmul.f32 %v2461_v47, %v3600_v2  ;;  %v3738_v5 = vmul.f32 %v2461_v47, %v3613_v10  ;;  %2482 = vpow2.f32 %v3588_v42  ;;  %v3741_v25 = vmul.f32 1.442695, %v1406_v32  ;;  %v4541_v32 = vld [vmem:[#allocation9_spill] sm:$0xff] }
 0x22c   : > { %v3745_v35 = vpop.eup %2464  ;;  %2484 = vrcp.f32 %v1587_v29  ;;  %v1375_v43 = vsub.f32 %v3145_v7, %v1343_v61  ;;  %v1407_v19 = vsub.f32 %v3598_v23, %v1343_v61  ;;  %v1344_v2 = vmax.f32 %v3148_v12, %v3611_v33  ;;  %v4542_v29 = vld [vmem:[#allocation10_spill] sm:$0xff] }
 0x22d   : > { %4539 = vst [vmem:[#allocation66_spill] sm:$0xff] %v3735_v4  ;;  %4540 = vst [vmem:[#allocation67_spill] sm:$0xff] %v3738_v5  ;;  %v3751_v4 = vpop.f32.mrb[45].mxu1  ;;  %v2467_v10 = vpop.eup %2466  ;;  %v1588_v42 = vadd.f32 %v3745_v35, %v3732_v48  ;;  %2486 = vpow2.f32 %v3594_v21  ;;  %v1345_v47 = vmax.f32 %v4541_v32, %v3637_v17  ;;  %v1346_v5 = vmax.f32 %v4542_v29, %v3645_v8 }
 0x22e   : > { %v3760_v7 = vpop.eup %2468  ;;  %v3763_v23 = vmul.f32 %v2467_v10, %v3626_v62  ;;  %v3766_v61 = vmul.f32 %v2467_v10, %v3639_v24  ;;  %2488 = vpow2.f32 %v3609_v13  ;;  %v3769_v58 = vmul.f32 1.442695, %v1375_v43  ;;  %v3777_v0 = vpop.f32.mrb[46].mxu1 }
 0x22f   : > { %v3771_v20 = vpop.eup %2470  ;;  %2490 = vrcp.f32 %v1588_v42  ;;  %v3773_v21 = vmul.f32 1.442695, %v1407_v19  ;;  %v1376_v44 = vsub.f32 %v3148_v12, %v1344_v2  ;;  %v1408_v40 = vsub.f32 %v3611_v33, %v1344_v2  ;;  %v3784_v10 = vpop.f32.mrb[47].mxu1 }
 0x230   : > { %4543 = vst [vmem:[#allocation9_spill] sm:$0xff] %v3763_v23  ;;  %4544 = vst [vmem:[#allocation10_spill] sm:$0xff] %v3766_v61  ;;  %v2473_v62 = vpop.eup %2472  ;;  %v1589_v24 = vadd.f32 %v3771_v20, %v3760_v7  ;;  %2492 = vpow2.f32 %v3635_v60  ;;  %v1377_v13 = vsub.f32 %v4541_v32, %v1345_v47  ;;  %v1409_v43 = vsub.f32 %v3637_v17, %v1345_v47 }
 0x231   : > { %v3786_v19 = vpop.eup %2474  ;;  %v3789_v12 = vmul.f32 %v2473_v62, %v3652_v1  ;;  %v3792_v33 = vmul.f32 %v2473_v62, %v3663_v52  ;;  %2494 = vpow2.f32 %v3641_v9  ;;  %v3795_v2 = vmul.f32 1.442695, %v1376_v44 }
 0x232   : > { %v3797_v42 = vpop.eup %2476  ;;  %2496 = vrcp.f32 %v1589_v24  ;;  %v3799_v60 = vmul.f32 1.442695, %v1408_v40  ;;  %v3801_v17 = vmul.f32 1.442695, %v1377_v13  ;;  %v3803_v32 = vmul.f32 1.442695, %v1409_v43 }
 0x233   : > { %4545 = vst [vmem:[#allocation68_spill] sm:$0xff] %v3789_v12  ;;  %4546 = vst [vmem:[#allocation69_spill] sm:$0xff] %v3792_v33  ;;  %v2479_v47 = vpop.eup %2478  ;;  %v1590_v1 = vadd.f32 %v3797_v42, %v3786_v19  ;;  %2498 = vpow2.f32 %v3661_v27  ;;  %v1378_v52 = vsub.f32 %v4542_v29, %v1346_v5  ;;  %v1410_v9 = vsub.f32 %v3645_v8, %v1346_v5  ;;  %v3810_v44 = vpop.f32.mrb[48].mxu1  ;;  %v4549_v13 = vld [vmem:[#allocation11_spill] sm:$0xff] }
 0x234   : > { %v3812_v62 = vpop.eup %2480  ;;  %v3815_v40 = vmul.f32 %v2479_v47, %v3678_v11  ;;  %v3818_v24 = vmul.f32 %v2479_v47, %v3691_v49  ;;  %2500 = vpow2.f32 %v3665_v39  ;;  %v1347_v43 = vmax.f32 %v4549_v13, %v3676_v53  ;;  %v3823_v27 = vpop.f32.mrb[49].mxu1  ;;  %v4550_v11 = vld [vmem:[#allocation12_spill] sm:$0xff] }
 0x235   : > { %v3825_v29 = vpop.eup %2482  ;;  %2502 = vrcp.f32 %v1590_v1  ;;  %v3827_v8 = vmul.f32 1.442695, %v1378_v52  ;;  %v3829_v5 = vmul.f32 1.442695, %v1410_v9 }
 0x236   : > { %4547 = vst [vmem:[#allocation70_spill] sm:$0xff] %v3815_v40  ;;  %4548 = vst [vmem:[#allocation71_spill] sm:$0xff] %v3818_v24  ;;  %v1348_v40 = vmax.f32 %v4550_v11, %v3689_v31  ;;  %v2485_v33 = vpop.eup %2484  ;;  %v1591_v49 = vadd.f32 %v3825_v29, %v3812_v62  ;;  %2504 = vpow2.f32 %v3667_v46  ;;  %v1379_v39 = vsub.f32 %v4549_v13, %v1347_v43  ;;  %v3848_v12 = vpop.f32.mrb[50].mxu1 }
 0x237   : > { %v1411_v47 = vsub.f32 %v3676_v53, %v1347_v43  ;;  %v3838_v24 = vpop.eup %2486  ;;  %v3841_v1 = vmul.f32 %v2485_v33, %v3706_v45  ;;  %v3844_v52 = vmul.f32 %v2485_v33, %v3718_v16  ;;  %2506 = vpow2.f32 %v3669_v30  ;;  %v3857_v45 = vpop.f32.mrb[51].mxu1  ;;  %v4553_v33 = vld [vmem:[#allocation13_spill] sm:$0xff] }
 0x238   : > { %v1380_v9 = vsub.f32 %v4550_v11, %v1348_v40  ;;  %v3850_v61 = vpop.eup %2488  ;;  %2508 = vrcp.f32 %v1591_v49  ;;  %v3852_v46 = vmul.f32 1.442695, %v1379_v39  ;;  %v1412_v13 = vsub.f32 %v3689_v31, %v1348_v40 }
 0x239   : > { %4551 = vst [vmem:[#allocation11_spill] sm:$0xff] %v3841_v1  ;;  %4552 = vst [vmem:[#allocation12_spill] sm:$0xff] %v3844_v52  ;;  %v3854_v53 = vmul.f32 1.442695, %v1411_v47  ;;  %v2491_v43 = vpop.eup %2490  ;;  %v1592_v16 = vadd.f32 %v3850_v61, %v3838_v24  ;;  %2510 = vpow2.f32 %v3693_v37  ;;  %v1349_v11 = vmax.f32 %v4553_v33, %v3704_v34  ;;  %v4556_v52 = vld [vmem:[#allocation14_spill] sm:$0xff] }
 0x23a   : > { %v3862_v30 = vmul.f32 1.442695, %v1380_v9  ;;  %v3866_v49 = vpop.eup %2492  ;;  %v3869_v39 = vmul.f32 %v2491_v43, %v3732_v48  ;;  %v3872_v31 = vmul.f32 %v2491_v43, %v3745_v35  ;;  %2512 = vpow2.f32 %v3695_v3  ;;  %v3883_v23 = vpop.f32.mrb[52].mxu1  ;;  %v4557_v3 = vld [vmem:[#allocation15_spill] sm:$0xff]  ;;  %v4558_v43 = vld [vmem:[#allocation16_spill] sm:$0xff] }
 0x23b   : > { %v3875_v40 = vmul.f32 1.442695, %v1412_v13  ;;  %v3877_v47 = vpop.eup %2494  ;;  %2514 = vrcp.f32 %v1592_v16  ;;  %v1381_v37 = vsub.f32 %v4553_v33, %v1349_v11  ;;  %v1413_v9 = vsub.f32 %v3704_v34, %v1349_v11  ;;  %v3892_v33 = vpop.f32.mrb[53].mxu1 }
 0x23c   : > { %4554 = vst [vmem:[#allocation13_spill] sm:$0xff] %v3869_v39  ;;  %4555 = vst [vmem:[#allocation72_spill] sm:$0xff] %v3872_v31  ;;  %v1350_v1 = vmax.f32 %v4556_v52, %v3716_v41  ;;  %v2497_v48 = vpop.eup %2496  ;;  %v1593_v35 = vadd.f32 %v3877_v47, %v3866_v49  ;;  %2516 = vpow2.f32 %v3720_v56  ;;  %v1351_v13 = vmax.f32 %v4557_v3, %v3743_v14 }
 0x23d   : > { %v1352_v16 = vmax.f32 %v4558_v43, %v3751_v4  ;;  %v3894_v34 = vpop.eup %2498  ;;  %v3897_v11 = vmul.f32 %v2497_v48, %v3760_v7  ;;  %v3900_v31 = vmul.f32 %v2497_v48, %v3771_v20  ;;  %2518 = vpow2.f32 %v3722_v63 }
 0x23e   : > { %v3903_v39 = vmul.f32 1.442695, %v1381_v37  ;;  %v3905_v56 = vpop.eup %2500  ;;  %2520 = vrcp.f32 %v1593_v35  ;;  %v3907_v6 = vmul.f32 1.442695, %v1413_v9  ;;  %v1382_v50 = vsub.f32 %v4556_v52, %v1350_v1  ;;  %v3916_v37 = vpop.f32.mrb[54].mxu1 }
 0x23f   : > { %4559 = vst [vmem:[#allocation14_spill] sm:$0xff] %v3897_v11  ;;  %4560 = vst [vmem:[#allocation15_spill] sm:$0xff] %v3900_v31  ;;  %v1414_v38 = vsub.f32 %v3716_v41, %v1350_v1  ;;  %v2503_v54 = vpop.eup %2502  ;;  %v1594_v7 = vadd.f32 %v3905_v56, %v3894_v34  ;;  %2522 = vpow2.f32 %v3728_v36  ;;  %v1383_v20 = vsub.f32 %v4557_v3, %v1351_v13  ;;  %v3929_v1 = vpop.f32.mrb[55].mxu1  ;;  %v4575_v11 = vld [vmem:[#allocation21_spill] sm:$0xff] }
 0x240   : > { %v1415_v63 = vsub.f32 %v3743_v14, %v1351_v13  ;;  %v3918_v48 = vpop.eup %2504  ;;  %v3921_v9 = vmul.f32 %v2503_v54, %v3786_v19  ;;  %v3924_v52 = vmul.f32 %v2503_v54, %v3797_v42  ;;  %2524 = vpow2.f32 %v3741_v25 }
 0x241   : > { %v3927_v41 = vmul.f32 1.442695, %v1382_v50  ;;  %v3931_v36 = vpop.eup %2506  ;;  %2526 = vrcp.f32 %v1594_v7  ;;  %v3933_v14 = vmul.f32 1.442695, %v1414_v38  ;;  %v3935_v35 = vmul.f32 1.442695, %v1383_v20 }
 0x242   : > { %4561 = vst [vmem:[#allocation16_spill] sm:$0xff] %v3921_v9  ;;  %4562 = vst [vmem:[#allocation73_spill] sm:$0xff] %v3924_v52  ;;  %v3937_v3 = vmul.f32 1.442695, %v1415_v63  ;;  %v2509_v19 = vpop.eup %2508  ;;  %v1659_v54 = vadd.f32 %v3931_v36, %v3918_v48  ;;  %2528 = vpow2.f32 %v3769_v58  ;;  %v1384_v50 = vsub.f32 %v4558_v43, %v1352_v16  ;;  %v4565_v7 = vld [vmem:[#allocation17_spill] sm:$0xff]  ;;  %v3955_v63 = vpop.f32.mrb[56].mxu1 }
 0x243   : > { %v1416_v25 = vsub.f32 %v3751_v4, %v1352_v16  ;;  %v3944_v42 = vpop.eup %2510  ;;  %v3947_v13 = vmul.f32 %v2509_v19, %v3812_v62  ;;  %v3950_v38 = vmul.f32 %v2509_v19, %v3825_v29  ;;  %2530 = vpow2.f32 %v3773_v21  ;;  %v4566_v62 = vld [vmem:[#allocation18_spill] sm:$0xff] }
 0x244   : > { %v1353_v20 = vmax.f32 %v4565_v7, %v3777_v0  ;;  %v3957_v58 = vpop.eup %2512  ;;  %2532 = vrcp.f32 %v1659_v54  ;;  %v3959_v43 = vmul.f32 1.442695, %v1384_v50  ;;  %v1354_v16 = vmax.f32 %v4566_v62, %v3784_v10 }
 0x245   : > { %4563 = vst [vmem:[#allocation74_spill] sm:$0xff] %v3947_v13  ;;  %4564 = vst [vmem:[#allocation75_spill] sm:$0xff] %v3950_v38  ;;  %v3961_v4 = vmul.f32 1.442695, %v1416_v25  ;;  %v3965_v13 = vpop.f32.mrb[57].mxu1  ;;  %v2515_v29 = vpop.eup %2514  ;;  %v1660_v21 = vadd.f32 %v3957_v58, %v3944_v42  ;;  %2534 = vpow2.f32 %v3795_v2 }
 0x246   : > { %v1385_v19 = vsub.f32 %v4565_v7, %v1353_v20  ;;  %v1417_v38 = vsub.f32 %v3777_v0, %v1353_v20  ;;  %v3972_v54 = vpop.eup %2516  ;;  %v3975_v50 = vmul.f32 %v2515_v29, %v3838_v24  ;;  %v3978_v25 = vmul.f32 %v2515_v29, %v3850_v61  ;;  %v3989_v20 = vpop.f32.mrb[58].mxu1 }
 0x247   : > { %2536 = vpow2.f32 %v3799_v60  ;;  %v1386_v52 = vsub.f32 %v4566_v62, %v1354_v16  ;;  %v3982_v9 = vpop.eup %2518  ;;  %v1418_v0 = vsub.f32 %v3784_v10, %v1354_v16  ;;  %v1355_v62 = vmax.f32 %v3241_v26, %v3810_v44  ;;  %v3998_v29 = vpop.f32.mrb[59].mxu1 }
 0x248   : > { %4567 = vst [vmem:[#allocation17_spill] sm:$0xff] %v3975_v50  ;;  %4568 = vst [vmem:[#allocation18_spill] sm:$0xff] %v3978_v25  ;;  %2538 = vrcp.f32 %v1660_v21  ;;  %v3984_v2 = vmul.f32 1.442695, %v1385_v19  ;;  %v3986_v7 = vmul.f32 1.442695, %v1417_v38  ;;  %v2521_v24 = vpop.eup %2520  ;;  %v1661_v61 = vadd.f32 %v3982_v9, %v3972_v54 }
 0x249   : > { %2540 = vpow2.f32 %v3801_v17  ;;  %v3994_v60 = vmul.f32 1.442695, %v1386_v52  ;;  %v4000_v21 = vpop.eup %2522  ;;  %v4003_v38 = vmul.f32 %v2521_v24, %v3866_v49  ;;  %v4006_v10 = vmul.f32 %v2521_v24, %v3877_v47 }
 0x24a   : > { %2542 = vpow2.f32 %v3803_v32  ;;  %v4009_v16 = vmul.f32 1.442695, %v1418_v0  ;;  %v4011_v17 = vpop.eup %2524  ;;  %v1387_v52 = vsub.f32 %v3241_v26, %v1355_v62  ;;  %v1419_v19 = vsub.f32 %v3810_v44, %v1355_v62  ;;  %v4026_v0 = vpop.f32.mrb[60].mxu1 }
 0x24b   : > { %4569 = vst [vmem:[#allocation76_spill] sm:$0xff] %v4003_v38  ;;  %4570 = vst [vmem:[#allocation77_spill] sm:$0xff] %v4006_v10  ;;  %2544 = vrcp.f32 %v1661_v61  ;;  %v1356_v25 = vmax.f32 %v3247_v57, %v3823_v27  ;;  %v2527_v50 = vpop.eup %2526  ;;  %v1662_v49 = vadd.f32 %v4011_v17, %v4000_v21  ;;  %v1357_v32 = vmax.f32 %v3274_v59, %v3848_v12  ;;  %v4039_v61 = vpop.f32.mrb[61].mxu1 }
 0x24c   : > { %2546 = vpow2.f32 %v3827_v8  ;;  %v4024_v47 = vmax.f32 %v3279_v51, %v3857_v45  ;;  %v4028_v26 = vpop.eup %2528  ;;  %v4031_v44 = vmul.f32 %v2527_v50, %v3894_v34  ;;  %v4034_v24 = vmul.f32 %v2527_v50, %v3905_v56 }
 0x24d   : > { %2548 = vpow2.f32 %v3829_v5  ;;  %v4037_v8 = vmul.f32 1.442695, %v1387_v52  ;;  %v4041_v62 = vpop.eup %2530  ;;  %v4043_v38 = vmul.f32 1.442695, %v1419_v19  ;;  %v1388_v10 = vsub.f32 %v3247_v57, %v1356_v25 }
 0x24e   : > { %4571 = vst [vmem:[#allocation78_spill] sm:$0xff] %v4031_v44  ;;  %4572 = vst [vmem:[#allocation79_spill] sm:$0xff] %v4034_v24  ;;  %2550 = vrcp.f32 %v1662_v49  ;;  %v1420_v31 = vsub.f32 %v3823_v27, %v1356_v25  ;;  %v2533_v34 = vpop.eup %2532  ;;  %v1663_v56 = vadd.f32 %v4041_v62, %v4028_v26  ;;  %v1389_v5 = vsub.f32 %v3274_v59, %v1357_v32  ;;  %v4059_v27 = vpop.f32.mrb[62].mxu1  ;;  %v4573_v24 = vld [vmem:[#allocation19_spill] sm:$0xff] }
 0x24f   : > { %2552 = vpow2.f32 %v3852_v46  ;;  %v1421_v50 = vsub.f32 %v3848_v12, %v1357_v32  ;;  %v4052_v52 = vpop.eup %2534  ;;  %v1819_v49 = vmul.f32 %v2533_v34, %v3918_v48  ;;  %v1851_v19 = vmul.f32 %v2533_v34, %v3931_v36 }
 0x250   : > { %2554 = vpow2.f32 %v3854_v53  ;;  %v4057_v57 = vmul.f32 1.442695, %v1388_v10  ;;  %v4063_v46 = vmul.f32 1.442695, %v1420_v31  ;;  %v4065_v59 = vmul.f32 1.442695, %v1389_v5 }
 0x251   : > { %v4061_v25 = vpop.eup %2536  ;;  %2556 = vrcp.f32 %v1663_v56  ;;  %v4067_v12 = vmul.f32 1.442695, %v1421_v50  ;;  %v1883_v48 = vsub.f32 %v3236_v55, %v1819_v49  ;;  %v1915_v36 = vsub.f32 %v4573_v24, %v1851_v19  ;;  %v4074_v10 = vpop.f32.mrb[63].mxu1  ;;  %v4574_v19 = vld [vmem:[#allocation20_spill] sm:$0xff] }
 0x252   : > { %v2539_v32 = vpop.eup %2538  ;;  %v1664_v53 = vadd.f32 %v4061_v25, %v4052_v52  ;;  %2558 = vpow2.f32 %v3862_v30  ;;  %v1390_v55 = vsub.f32 %v3279_v51, %v4024_v47  ;;  %v1422_v30 = vsub.f32 %v3857_v45, %v4024_v47 }
 0x253   : > { %v4076_v34 = vpop.eup %2540  ;;  %v1820_v31 = vmul.f32 %v2539_v32, %v3944_v42  ;;  %v1852_v56 = vmul.f32 %v2539_v32, %v3957_v58  ;;  %2560 = vpow2.f32 %v3875_v40  ;;  %v1947_v24 = vand.u32 2147483647, %v1883_v48 }
 0x254   : > { %v4083_v5 = vpop.eup %2542  ;;  %v1979_v50 = vand.u32 2147483647, %v1915_v36  ;;  %2562 = vrcp.f32 %v1664_v53 }
 0x255   : > { %v2545_v49 = vpop.eup %2544  ;;  %v1884_v44 = vsub.f32 %v4574_v19, %v1820_v31  ;;  %v1916_v42 = vsub.f32 %v4575_v11, %v1852_v56  ;;  %v1665_v58 = vadd.f32 %v4083_v5, %v4076_v34  ;;  %2564 = vpow2.f32 %v3903_v39  ;;  %v4576_v31 = vld [vmem:[#allocation22_spill] sm:$0xff] }
 0x256   : > { %v4092_v40 = vpop.eup %2546  ;;  %v2011_v51 = vadd.f32 %v1979_v50, %v1947_v24  ;;  %v1821_v32 = vmul.f32 %v2545_v49, %v3972_v54  ;;  %v1853_v48 = vmul.f32 %v2545_v49, %v3982_v9  ;;  %2566 = vpow2.f32 %v3907_v6 }
 0x257   : > { %v4097_v45 = vpop.eup %2548  ;;  %v1948_v47 = vand.u32 2147483647, %v1884_v44  ;;  %v1980_v36 = vand.u32 2147483647, %v1916_v42  ;;  %2568 = vrcp.f32 %v1665_v58  ;;  %v4099_v11 = vmul.f32 1.442695, %v1390_v55 }
 0x258   : > { %v2551_v53 = vpop.eup %2550  ;;  %v1885_v56 = vsub.f32 %v4576_v31, %v1821_v32  ;;  %v1917_v39 = vsub.f32 %v3269_v15, %v1853_v48  ;;  %v1666_v24 = vadd.f32 %v4097_v45, %v4092_v40  ;;  %2570 = vpow2.f32 %v3927_v41 }
 0x259   : > { %v4106_v9 = vpop.eup %2552  ;;  %v2012_v6 = vadd.f32 %v1980_v36, %v1948_v47  ;;  %v1822_v54 = vmul.f32 %v2551_v53, %v4000_v21  ;;  %v1854_v44 = vmul.f32 %v2551_v53, %v4011_v17  ;;  %2572 = vpow2.f32 %v3933_v14 }
 0x25a   : > { %v4111_v55 = vpop.eup %2554  ;;  %v1949_v50 = vand.u32 2147483647, %v1885_v56  ;;  %v1981_v49 = vand.u32 2147483647, %v1917_v39  ;;  %2574 = vrcp.f32 %v1666_v24  ;;  %v4113_v15 = vmul.f32 1.442695, %v1422_v30 }
 0x25b   : > { %v2557_v19 = vpop.eup %2556  ;;  %v1886_v42 = vsub.f32 %v3284_v22, %v1822_v54  ;;  %v1918_v41 = vsub.f32 %v3287_v28, %v1854_v44  ;;  %v1667_v58 = vadd.f32 %v4111_v55, %v4106_v9  ;;  %2576 = vpow2.f32 %v3935_v35  ;;  %v4577_v28 = vld [vmem:[#allocation25_spill] sm:$0xff]  ;;  %v4578_v35 = vld [vmem:[#allocation23_spill] sm:$0xff]  ;;  %v4579_v56 = vld [vmem:[#allocation24_spill] sm:$0xff] }
 0x25c   : > { %v4120_v21 = vpop.eup %2558  ;;  %v2013_v14 = vadd.f32 %v1981_v49, %v1949_v50  ;;  %v1823_v17 = vmul.f32 %v2557_v19, %v4028_v26  ;;  %v1855_v32 = vmul.f32 %v2557_v19, %v4041_v62  ;;  %2578 = vpow2.f32 %v3937_v3 }
 0x25d   : > { %v4125_v30 = vpop.eup %2560  ;;  %v1950_v48 = vand.u32 2147483647, %v1886_v42  ;;  %v1982_v22 = vand.u32 2147483647, %v1918_v41  ;;  %2580 = vrcp.f32 %v1667_v58  ;;  %v1359_v47 = vmax.f32 %v4577_v28, %v3883_v23  ;;  %v4580_v58 = vld [vmem:[#allocation27_spill] sm:$0xff] }
 0x25e   : > { %v2563_v36 = vpop.eup %2562  ;;  %v2043_v53 = vadd.f32 %v2013_v14, %v2011_v51  ;;  %v1887_v31 = vsub.f32 %v4578_v35, %v1823_v17  ;;  %v1919_v39 = vsub.f32 %v4579_v56, %v1855_v32  ;;  %v1668_v26 = vadd.f32 %v4125_v30, %v4120_v21  ;;  %v4581_v35 = vld [vmem:[#allocation28_spill] sm:$0xff]  ;;  %v4582_v56 = vld [vmem:[#allocation29_spill] sm:$0xff] }
 0x25f   : > { %v4133_v62 = vpop.eup %2564  ;;  %v2014_v3 = vadd.f32 %v1982_v22, %v1950_v48  ;;  %v1824_v24 = vmul.f32 %v2563_v36, %v4052_v52  ;;  %v1856_v54 = vmul.f32 %v2563_v36, %v4061_v25  ;;  %2582 = vpow2.f32 %v3959_v43 }
 0x260   : > { %v4138_v44 = vpop.eup %2566  ;;  %v1951_v50 = vand.u32 2147483647, %v1887_v31  ;;  %v1983_v51 = vand.u32 2147483647, %v1919_v39  ;;  %2584 = vrcp.f32 %v1668_v26  ;;  %v1391_v49 = vsub.f32 %v4577_v28, %v1359_v47 }
 0x261   : > { %v2569_v19 = vpop.eup %2568  ;;  %v2058_v42 = vadd.f32 %v2014_v3, %v2012_v6  ;;  %v1888_v41 = vsub.f32 %v3320_v18, %v1824_v24  ;;  %v1920_v14 = vsub.f32 %v4580_v58, %v1856_v54  ;;  %v1669_v52 = vadd.f32 %v4138_v44, %v4133_v62 }
 0x262   : > { %v4145_v17 = vpop.eup %2570  ;;  %v2015_v25 = vadd.f32 %v1983_v51, %v1951_v50  ;;  %v1825_v43 = vmul.f32 %v2569_v19, %v4076_v34  ;;  %v1857_v32 = vmul.f32 %v2569_v19, %v4083_v5  ;;  %2586 = vpow2.f32 %v3961_v4  ;;  %v4583_v51 = vld [vmem:[#allocation32_spill] sm:$0xff] }
 0x263   : > { %v4150_v48 = vpop.eup %2572  ;;  %v1952_v22 = vand.u32 2147483647, %v1888_v41  ;;  %v1984_v6 = vand.u32 2147483647, %v1920_v14  ;;  %2588 = vrcp.f32 %v1669_v52  ;;  %v1423_v18 = vsub.f32 %v3883_v23, %v1359_v47  ;;  %v4584_v41 = vld [vmem:[#allocation33_spill] sm:$0xff] }
 0x264   : > { %v2575_v28 = vpop.eup %2574  ;;  %v2044_v36 = vadd.f32 %v2043_v53, %v2015_v25  ;;  %v1889_v31 = vsub.f32 %v4581_v35, %v1825_v43  ;;  %v1921_v39 = vsub.f32 %v4582_v56, %v1857_v32  ;;  %v1670_v34 = vadd.f32 %v4150_v48, %v4145_v17 }
 0x265   : > { %v4157_v26 = vpop.eup %2576  ;;  %v2016_v5 = vadd.f32 %v1984_v6, %v1952_v22  ;;  %v1826_v4 = vmul.f32 %v2575_v28, %v4092_v40  ;;  %v1858_v3 = vmul.f32 %v2575_v28, %v4097_v45  ;;  %2590 = vpow2.f32 %v3984_v2  ;;  %v4585_v22 = vld [vmem:[#allocation36_spill] sm:$0xff]  ;;  %v4586_v28 = vld [vmem:[#allocation37_spill] sm:$0xff] }
 0x266   : > { %v4162_v24 = vpop.eup %2578  ;;  %v1953_v23 = vand.u32 2147483647, %v1889_v31  ;;  %v1985_v47 = vand.u32 2147483647, %v1921_v39  ;;  %2592 = vrcp.f32 %v1670_v34  ;;  %v4164_v53 = vmul.f32 1.442695, %v1391_v49 }
 0x267   : > { %v2581_v54 = vpop.eup %2580  ;;  %v2059_v50 = vadd.f32 %v2058_v42, %v2016_v5  ;;  %v1890_v19 = vsub.f32 %v4583_v51, %v1826_v4  ;;  %v1922_v58 = vsub.f32 %v4584_v41, %v1858_v3  ;;  %v1671_v40 = vadd.f32 %v4162_v24, %v4157_v26  ;;  %v4588_v4 = vld [vmem:[#allocation40_spill] sm:$0xff]  ;;  %v4589_v3 = vld [vmem:[#allocation41_spill] sm:$0xff] }
 0x268   : > { %v2017_v14 = vadd.f32 %v1985_v47, %v1953_v23  ;;  %v1827_v45 = vmul.f32 %v2581_v54, %v4106_v9  ;;  %v1859_v2 = vmul.f32 %v2581_v54, %v4111_v55  ;;  %2594 = vpow2.f32 %v3986_v7 }
 0x269   : > { %v4173_v52 = vpop.eup %2582  ;;  %v1954_v49 = vand.u32 2147483647, %v1890_v19  ;;  %v1986_v25 = vand.u32 2147483647, %v1922_v58  ;;  %2596 = vrcp.f32 %v1671_v40  ;;  %v4175_v42 = vmul.f32 1.442695, %v1423_v18 }
 0x26a   : > { %v2585_v43 = vpop.eup %2584  ;;  %v2045_v32 = vadd.f32 %v2044_v36, %v2017_v14  ;;  %v1891_v6 = vsub.f32 %v4585_v22, %v1827_v45  ;;  %v1923_v35 = vsub.f32 %v4586_v28, %v1859_v2  ;;  %2598 = vpow2.f32 %v3994_v60  ;;  %v4587_v36 = vld [vmem:[#allocation26_spill] sm:$0xff]  ;;  %v4590_v58 = vld [vmem:[#allocation44_spill] sm:$0xff]  ;;  %v4591_v14 = vld [vmem:[#allocation45_spill] sm:$0xff] }
 0x26b   : > { %v2018_v9 = vadd.f32 %v1986_v25, %v1954_v49  ;;  %v1828_v55 = vmul.f32 %v2585_v43, %v4120_v21  ;;  %v1860_v7 = vmul.f32 %v2585_v43, %v4125_v30  ;;  %2600 = vpow2.f32 %v4009_v16 }
 0x26c   : > { %v4183_v31 = vpop.eup %2586  ;;  %v1955_v56 = vand.u32 2147483647, %v1891_v6  ;;  %v1987_v18 = vand.u32 2147483647, %v1923_v35  ;;  %2602 = vpow2.f32 %v4037_v8  ;;  %v1360_v39 = vmax.f32 %v4587_v36, %v3892_v33  ;;  %v4592_v6 = vld [vmem:[#allocation48_spill] sm:$0xff] }
 0x26d   : > { %v2589_v34 = vpop.eup %2588  ;;  %v2060_v5 = vadd.f32 %v2059_v50, %v2018_v9  ;;  %v1892_v60 = vsub.f32 %v4588_v4, %v1828_v55  ;;  %v1924_v23 = vsub.f32 %v4589_v3, %v1860_v7  ;;  %v1672_v21 = vadd.f32 %v4183_v31, %v4173_v52 }
 0x26e   : > { %v2019_v30 = vadd.f32 %v1987_v18, %v1955_v56  ;;  %v1829_v16 = vmul.f32 %v2589_v34, %v4133_v62  ;;  %v1861_v47 = vmul.f32 %v2589_v34, %v4138_v44  ;;  %2604 = vpow2.f32 %v4043_v38 }
 0x26f   : > { %v4195_v8 = vpop.eup %2590  ;;  %v1956_v54 = vand.u32 2147483647, %v1892_v60  ;;  %v1988_v51 = vand.u32 2147483647, %v1924_v23  ;;  %2606 = vrcp.f32 %v1672_v21  ;;  %v1392_v50 = vsub.f32 %v4587_v36, %v1360_v39 }
 0x270   : > { %v2593_v19 = vpop.eup %2592  ;;  %v2046_v41 = vadd.f32 %v2045_v32, %v2019_v30  ;;  %v1893_v40 = vsub.f32 %v4590_v58, %v1829_v16  ;;  %v1925_v45 = vsub.f32 %v4591_v14, %v1861_v47  ;;  %2608 = vpow2.f32 %v4057_v57  ;;  %v4593_v57 = vld [vmem:[#allocation49_spill] sm:$0xff]  ;;  %v4597_v16 = vld [vmem:[#allocation31_spill] sm:$0xff] }
 0x271   : > { %v2020_v62 = vadd.f32 %v1988_v51, %v1956_v54  ;;  %v1830_v44 = vmul.f32 %v2593_v19, %v4145_v17  ;;  %v1862_v38 = vmul.f32 %v2593_v19, %v4150_v48  ;;  %2610 = vpow2.f32 %v4063_v46 }
 0x272   : > { %v4204_v2 = vpop.eup %2594  ;;  %v1957_v49 = vand.u32 2147483647, %v1893_v40  ;;  %v1989_v25 = vand.u32 2147483647, %v1925_v45  ;;  %2612 = vpow2.f32 %v4065_v59  ;;  %v1424_v43 = vsub.f32 %v3892_v33, %v1360_v39  ;;  %v4594_v39 = vld [vmem:[#allocation50_spill] sm:$0xff] }
 0x273   : > { %v2597_v32 = vpop.eup %2596  ;;  %v2061_v22 = vadd.f32 %v2060_v5, %v2020_v62  ;;  %v1894_v28 = vsub.f32 %v4592_v6, %v1830_v44  ;;  %v1926_v35 = vsub.f32 %v4593_v57, %v1862_v38  ;;  %v1673_v17 = vadd.f32 %v4204_v2, %v4195_v8  ;;  %v4595_v5 = vld [vmem:[#allocation51_spill] sm:$0xff]  ;;  %v4600_v57 = vld [vmem:[#allocation34_spill] sm:$0xff] }
 0x274   : > { %v4212_v48 = vpop.eup %2598  ;;  %v2021_v46 = vadd.f32 %v1989_v25, %v1957_v49  ;;  %v1831_v9 = vmul.f32 %v2597_v32, %v4157_v26  ;;  %v1863_v55 = vmul.f32 %v2597_v32, %v4162_v24  ;;  %2614 = vpow2.f32 %v4067_v12  ;;  %v4596_v24 = vld [vmem:[#allocation30_spill] sm:$0xff]  ;;  %v4598_v49 = vld [vmem:[#allocation52_spill] sm:$0xff] }
 0x275   : > { %v4217_v59 = vpop.eup %2600  ;;  %v1958_v33 = vand.u32 2147483647, %v1894_v28  ;;  %v1990_v7 = vand.u32 2147483647, %v1926_v35  ;;  %2616 = vrcp.f32 %v1673_v17  ;;  %v1477_v56 = vmul.f32 1.442695, %v1392_v50 }
 0x276   : > { %v4219_v18 = vpop.eup %2602  ;;  %v2047_v36 = vadd.f32 %v2046_v41, %v2021_v46  ;;  %v1895_v34 = vsub.f32 %v4594_v39, %v1831_v9  ;;  %v1927_v4 = vsub.f32 %v4595_v5, %v1863_v55  ;;  %v1674_v26 = vadd.f32 %v4217_v59, %v4212_v48 }
 0x277   : > { %v2022_v60 = vadd.f32 %v1990_v7, %v1958_v33  ;;  %2618 = vpow2.f32 %v4099_v11  ;;  %v1541_v12 = vmul.f32 1.442695, %v1424_v43  ;;  %v1361_v3 = vmax.f32 %v4596_v24, %v3916_v37  ;;  %v4599_v43 = vld [vmem:[#allocation53_spill] sm:$0xff] }
 0x278   : > { %v4228_v23 = vpop.eup %2604  ;;  %v1959_v21 = vand.u32 2147483647, %v1895_v34  ;;  %v1991_v30 = vand.u32 2147483647, %v1927_v4  ;;  %2620 = vrcp.f32 %v1674_v26  ;;  %v1362_v47 = vmax.f32 %v4597_v16, %v3929_v1  ;;  %v4602_v26 = vld [vmem:[#allocation54_spill] sm:$0xff] }
 0x279   : > { %v2607_v54 = vpop.eup %2606  ;;  %v2062_v51 = vadd.f32 %v2061_v22, %v2022_v60  ;;  %v1675_v50 = vadd.f32 %v4228_v23, %v4219_v18  ;;  %2622 = vpow2.f32 %v4113_v15  ;;  %v1393_v11 = vsub.f32 %v4596_v24, %v1361_v3  ;;  %v4603_v24 = vld [vmem:[#allocation55_spill] sm:$0xff] }
 0x27a   : > { %v4236_v19 = vpop.eup %2608  ;;  %v2023_v41 = vadd.f32 %v1991_v30, %v1959_v21  ;;  %v1832_v58 = vmul.f32 %v2607_v54, %v4173_v52  ;;  %v1864_v40 = vmul.f32 %v2607_v54, %v4183_v31  ;;  %2624 = vpow2.f32 %v4164_v53 }
 0x27b   : > { %v4241_v14 = vpop.eup %2610  ;;  %2626 = vrcp.f32 %v1675_v50  ;;  %v1425_v45 = vsub.f32 %v3916_v37, %v1361_v3  ;;  %v1479_v62 = vmul.f32 1.442695, %v1393_v11  ;;  %v1394_v44 = vsub.f32 %v4597_v16, %v1362_v47  ;;  %v4605_v11 = vld [vmem:[#allocation57_spill] sm:$0xff] }
 0x27c   : > { %v4245_v15 = vpop.eup %2612  ;;  %v2048_v38 = vadd.f32 %v2047_v36, %v2023_v41  ;;  %v1896_v25 = vsub.f32 %v4598_v49, %v1832_v58  ;;  %v1928_v32 = vsub.f32 %v4599_v43, %v1864_v40  ;;  %v1676_v52 = vadd.f32 %v4241_v14, %v4236_v19 }
 0x27d   : > { %2628 = vpow2.f32 %v4175_v42  ;;  %v1543_v53 = vmul.f32 1.442695, %v1425_v45  ;;  %v1426_v31 = vsub.f32 %v3929_v1, %v1362_v47  ;;  %v1481_v22 = vmul.f32 1.442695, %v1394_v44  ;;  %v4601_v42 = vld [vmem:[#allocation35_spill] sm:$0xff] }
 0x27e   : > { %v4253_v37 = vpop.eup %2614  ;;  %v1960_v6 = vand.u32 2147483647, %v1896_v25  ;;  %v1992_v28 = vand.u32 2147483647, %v1928_v32  ;;  %2630 = vrcp.f32 %v1676_v52  ;;  %v1363_v35 = vmax.f32 %v4600_v57, %v3955_v63  ;;  %v4606_v32 = vld [vmem:[#allocation58_spill] sm:$0xff] }
 0x27f   : > { %v2617_v17 = vpop.eup %2616  ;;  %v1677_v46 = vadd.f32 %v4253_v37, %v4245_v15  ;;  %2632 = vpow2.f32 %v1477_v56  ;;  %v1545_v9 = vmul.f32 1.442695, %v1426_v31  ;;  %v4261_v55 = vmax.f32 %v4601_v42, %v3965_v13 }
 0x280   : > { %v2024_v1 = vadd.f32 %v1992_v28, %v1960_v6  ;;  %v1833_v33 = vmul.f32 %v2617_v17, %v4195_v8  ;;  %v1865_v7 = vmul.f32 %v2617_v17, %v4204_v2  ;;  %2634 = vpow2.f32 %v1541_v12 }
 0x281   : > { %v4265_v36 = vpop.eup %2618  ;;  %2636 = vrcp.f32 %v1677_v46  ;;  %v1395_v39 = vsub.f32 %v4600_v57, %v1363_v35  ;;  %v1427_v34 = vsub.f32 %v3955_v63, %v1363_v35  ;;  %v1396_v56 = vsub.f32 %v4601_v42, %v4261_v55 }
 0x282   : > { %v2621_v5 = vpop.eup %2620  ;;  %v2063_v4 = vadd.f32 %v2062_v51, %v2024_v1  ;;  %v1897_v60 = vsub.f32 %v4602_v26, %v1833_v33  ;;  %v1929_v3 = vsub.f32 %v4603_v24, %v1865_v7  ;;  %2638 = vpow2.f32 %v1479_v62  ;;  %v4604_v51 = vld [vmem:[#allocation56_spill] sm:$0xff]  ;;  %v4610_v24 = vld [vmem:[#allocation62_spill] sm:$0xff] }
 0x283   : > { %v4273_v8 = vpop.eup %2622  ;;  %v1834_v2 = vmul.f32 %v2621_v5, %v4212_v48  ;;  %v1866_v12 = vmul.f32 %v2621_v5, %v4217_v59  ;;  %2640 = vpow2.f32 %v1543_v53  ;;  %v1483_v21 = vmul.f32 1.442695, %v1395_v39  ;;  %v4607_v53 = vld [vmem:[#allocation59_spill] sm:$0xff] }
 0x284   : > { %v4277_v30 = vpop.eup %2624  ;;  %v1961_v63 = vand.u32 2147483647, %v1897_v60  ;;  %v1993_v16 = vand.u32 2147483647, %v1929_v3  ;;  %v1678_v47 = vadd.f32 %v4273_v8, %v4265_v36  ;;  %2642 = vpow2.f32 %v1481_v22 }
 0x285   : > { %v2627_v54 = vpop.eup %2626  ;;  %v1898_v50 = vsub.f32 %v4604_v51, %v1834_v2  ;;  %v1930_v41 = vsub.f32 %v4605_v11, %v1866_v12  ;;  %2644 = vpow2.f32 %v1545_v9  ;;  %v1547_v58 = vmul.f32 1.442695, %v1427_v34  ;;  %v4608_v9 = vld [vmem:[#allocation60_spill] sm:$0xff]  ;;  %v4611_v2 = vld [vmem:[#allocation63_spill] sm:$0xff] }
 0x286   : > { %v2025_v48 = vadd.f32 %v1993_v16, %v1961_v63  ;;  %v1835_v59 = vmul.f32 %v2627_v54, %v4219_v18  ;;  %v1867_v40 = vmul.f32 %v2627_v54, %v4228_v23  ;;  %2646 = vrcp.f32 %v1678_v47  ;;  %v4612_v63 = vld [vmem:[#allocation38_spill] sm:$0xff]  ;;  %v4613_v47 = vld [vmem:[#allocation39_spill] sm:$0xff] }
 0x287   : > { %v4285_v45 = vpop.eup %2628  ;;  %v1962_v62 = vand.u32 2147483647, %v1898_v50  ;;  %v1994_v44 = vand.u32 2147483647, %v1930_v41  ;;  %2648 = vpow2.f32 %v1483_v21  ;;  %v1428_v49 = vsub.f32 %v3965_v13, %v4261_v55  ;;  %v4609_v55 = vld [vmem:[#allocation61_spill] sm:$0xff] }
 0x288   : > { %v2631_v25 = vpop.eup %2630  ;;  %v2049_v43 = vadd.f32 %v2048_v38, %v2025_v48  ;;  %v1899_v52 = vsub.f32 %v4606_v32, %v1835_v59  ;;  %v1931_v31 = vsub.f32 %v4607_v53, %v1867_v40  ;;  %v1679_v18 = vadd.f32 %v4285_v45, %v4277_v30  ;;  %v4614_v32 = vld [vmem:[#allocation64_spill] sm:$0xff]  ;;  %v4615_v53 = vld [vmem:[#allocation65_spill] sm:$0xff] }
 0x289   : > { %v4293_v22 = vpop.eup %2632  ;;  %v2026_v23 = vadd.f32 %v1994_v44, %v1962_v62  ;;  %v1836_v6 = vmul.f32 %v2631_v25, %v4236_v19  ;;  %v1868_v28 = vmul.f32 %v2631_v25, %v4241_v14  ;;  %2650 = vpow2.f32 %v1547_v58 }
 0x28a   : > { %v4297_v57 = vpop.eup %2634  ;;  %v1963_v13 = vand.u32 2147483647, %v1899_v52  ;;  %v1995_v35 = vand.u32 2147483647, %v1931_v31  ;;  %2652 = vrcp.f32 %v1679_v18  ;;  %v1485_v38 = vmul.f32 1.442695, %v1396_v56 }
 0x28b   : > { %v2637_v17 = vpop.eup %2636  ;;  %v2064_v46 = vadd.f32 %v2063_v4, %v2026_v23  ;;  %v1900_v42 = vsub.f32 %v4608_v9, %v1836_v6  ;;  %v1932_v1 = vsub.f32 %v4609_v55, %v1868_v28  ;;  %v1680_v33 = vadd.f32 %v4297_v57, %v4293_v22  ;;  %v4617_v55 = vld [vmem:[#allocation43_spill] sm:$0xff] }
 0x28c   : > { %v4303_v7 = vpop.eup %2638  ;;  %v2027_v19 = vadd.f32 %v1995_v35, %v1963_v13  ;;  %v1837_v14 = vmul.f32 %v2637_v17, %v4245_v15  ;;  %v1869_v39 = vmul.f32 %v2637_v17, %v4253_v37  ;;  %2654 = vpow2.f32 %v1485_v38 }
 0x28d   : > { %v4307_v34 = vpop.eup %2640  ;;  %v1964_v56 = vand.u32 2147483647, %v1900_v42  ;;  %v1996_v5 = vand.u32 2147483647, %v1932_v1  ;;  %2656 = vrcp.f32 %v1680_v33  ;;  %v1549_v4 = vmul.f32 1.442695, %v1428_v49 }
 0x28e   : > { %v4309_v26 = vpop.eup %2642  ;;  %v2050_v60 = vadd.f32 %v2049_v43, %v2027_v19  ;;  %v1901_v3 = vsub.f32 %v4610_v24, %v1837_v14  ;;  %v1933_v12 = vsub.f32 %v4611_v2, %v1869_v39  ;;  %v1681_v21 = vadd.f32 %v4307_v34, %v4303_v7  ;;  %v4616_v42 = vld [vmem:[#allocation42_spill] sm:$0xff] }
 0x28f   : > { %v4315_v15 = vpop.eup %2644  ;;  %v2028_v37 = vadd.f32 %v1996_v5, %v1964_v56  ;;  %2658 = vpow2.f32 %v1549_v4  ;;  %v1365_v16 = vmax.f32 %v4612_v63, %v3989_v20  ;;  %v1366_v54 = vmax.f32 %v4613_v47, %v3998_v29  ;;  %v4618_v14 = vld [vmem:[#allocation66_spill] sm:$0xff]  ;;  %v4619_v56 = vld [vmem:[#allocation67_spill] sm:$0xff] }
 0x290   : > { %v2647_v51 = vpop.eup %2646  ;;  %v1965_v50 = vand.u32 2147483647, %v1901_v3  ;;  %v1997_v11 = vand.u32 2147483647, %v1933_v12  ;;  %2660 = vrcp.f32 %v1681_v21  ;;  %v1682_v41 = vadd.f32 %v4315_v15, %v4309_v26  ;;  %v4620_v21 = vld [vmem:[#allocation9_spill] sm:$0xff] }
 0x291   : > { %v4323_v58 = vpop.eup %2648  ;;  %v2065_v48 = vadd.f32 %v2064_v46, %v2028_v37  ;;  %v1838_v59 = vmul.f32 %v2647_v51, %v4265_v36  ;;  %v1870_v40 = vmul.f32 %v2647_v51, %v4273_v8  ;;  %v1397_v62 = vsub.f32 %v4612_v63, %v1365_v16  ;;  %v4621_v63 = vld [vmem:[#allocation10_spill] sm:$0xff] }
 0x292   : > { %v2029_v44 = vadd.f32 %v1997_v11, %v1965_v50  ;;  %2662 = vrcp.f32 %v1682_v41  ;;  %v1429_v49 = vsub.f32 %v3989_v20, %v1365_v16  ;;  %v1398_v25 = vsub.f32 %v4613_v47, %v1366_v54 }
 0x293   : > { %v4330_v43 = vpop.eup %2650  ;;  %v1902_v52 = vsub.f32 %v4614_v32, %v1838_v59  ;;  %v1934_v31 = vsub.f32 %v4615_v53, %v1870_v40  ;;  %v1487_v18 = vmul.f32 1.442695, %v1397_v62  ;;  %v1430_v23 = vsub.f32 %v3998_v29, %v1366_v54  ;;  %v4622_v40 = vld [vmem:[#allocation68_spill] sm:$0xff] }
 0x294   : > { %v2653_v36 = vpop.eup %2652  ;;  %v2051_v6 = vadd.f32 %v2050_v60, %v2029_v44  ;;  %v1683_v8 = vadd.f32 %v4330_v43, %v4323_v58  ;;  %v1551_v28 = vmul.f32 1.442695, %v1429_v49  ;;  %v1489_v13 = vmul.f32 1.442695, %v1398_v25  ;;  %v4623_v44 = vld [vmem:[#allocation69_spill] sm:$0xff] }
 0x295   : > { %v1966_v35 = vand.u32 2147483647, %v1902_v52  ;;  %v1998_v20 = vand.u32 2147483647, %v1934_v31  ;;  %v1839_v38 = vmul.f32 %v2653_v36, %v4277_v30  ;;  %v1871_v17 = vmul.f32 %v2653_v36, %v4285_v45 }
 0x296   : > { %v4339_v46 = vpop.eup %2654  ;;  %2664 = vrcp.f32 %v1683_v8  ;;  %v1553_v9 = vmul.f32 1.442695, %v1430_v23  ;;  %v1367_v29 = vmax.f32 %v4616_v42, %v4026_v0  ;;  %v1368_v1 = vmax.f32 %v4617_v55, %v4039_v61 }
 0x297   : > { %v2657_v33 = vpop.eup %2656  ;;  %v2030_v19 = vadd.f32 %v1998_v20, %v1966_v35  ;;  %v1903_v39 = vsub.f32 %v4618_v14, %v1839_v38  ;;  %v1935_v5 = vsub.f32 %v4619_v56, %v1871_v17  ;;  %2666 = vpow2.f32 %v1487_v18  ;;  %v4627_v14 = vld [vmem:[#allocation11_spill] sm:$0xff]  ;;  %v4628_v56 = vld [vmem:[#allocation12_spill] sm:$0xff] }
 0x298   : > { %v1840_v30 = vmul.f32 %v2657_v33, %v4293_v22  ;;  %v1872_v45 = vmul.f32 %v2657_v33, %v4297_v57  ;;  %2668 = vpow2.f32 %v1551_v28  ;;  %v1399_v4 = vsub.f32 %v4616_v42, %v1367_v29 }
 0x299   : > { %v4350_v60 = vpop.eup %2658  ;;  %v2066_v24 = vadd.f32 %v2065_v48, %v2030_v19  ;;  %v1967_v3 = vand.u32 2147483647, %v1903_v39  ;;  %v1999_v2 = vand.u32 2147483647, %v1935_v5  ;;  %2670 = vpow2.f32 %v1489_v13 }
 0x29a   : > { %v2661_v12 = vpop.eup %2660  ;;  %v1904_v37 = vsub.f32 %v4620_v21, %v1840_v30  ;;  %v1936_v16 = vsub.f32 %v4621_v63, %v1872_v45  ;;  %v1684_v47 = vadd.f32 %v4350_v60, %v4339_v46  ;;  %2672 = vpow2.f32 %v1553_v9 }
 0x29b   : > { %v2031_v22 = vadd.f32 %v1999_v2, %v1967_v3  ;;  %v1841_v57 = vmul.f32 %v2661_v12, %v4303_v7  ;;  %v1873_v54 = vmul.f32 %v2661_v12, %v4307_v34  ;;  %v1431_v51 = vsub.f32 %v4026_v0, %v1367_v29  ;;  %v4624_v0 = vld [vmem:[#allocation70_spill] sm:$0xff] }
 0x29c   : > { %v2663_v50 = vpop.eup %2662  ;;  %v1968_v11 = vand.u32 2147483647, %v1904_v37  ;;  %v2000_v41 = vand.u32 2147483647, %v1936_v16  ;;  %2674 = vrcp.f32 %v1684_v47  ;;  %v1491_v48 = vmul.f32 1.442695, %v1399_v4 }
 0x29d   : > { %v2052_v59 = vadd.f32 %v2051_v6, %v2031_v22  ;;  %v1905_v62 = vsub.f32 %v4622_v40, %v1841_v57  ;;  %v1937_v49 = vsub.f32 %v4623_v44, %v1873_v54  ;;  %v1842_v25 = vmul.f32 %v2663_v50, %v4309_v26  ;;  %v4625_v6 = vld [vmem:[#allocation71_spill] sm:$0xff]  ;;  %v4626_v29 = vld [vmem:[#allocation46_spill] sm:$0xff]  ;;  %v4630_v57 = vld [vmem:[#allocation13_spill] sm:$0xff] }
 0x29e   : > { %v2032_v32 = vadd.f32 %v2000_v41, %v1968_v11  ;;  %v1874_v52 = vmul.f32 %v2663_v50, %v4315_v15  ;;  %2676 = vpow2.f32 %v1491_v48  ;;  %v1555_v7 = vmul.f32 1.442695, %v1431_v51  ;;  %v4629_v22 = vld [vmem:[#allocation47_spill] sm:$0xff]  ;;  %v4631_v51 = vld [vmem:[#allocation72_spill] sm:$0xff] }
 0x29f   : > { %v1969_v34 = vand.u32 2147483647, %v1905_v62  ;;  %v2001_v53 = vand.u32 2147483647, %v1937_v49  ;;  %v1906_v31 = vsub.f32 %v4624_v0, %v1842_v25  ;;  %v1400_v18 = vsub.f32 %v4617_v55, %v1368_v1 }
 0x2a0   : > { %v2665_v23 = vpop.eup %2664  ;;  %v2067_v36 = vadd.f32 %v2066_v24, %v2032_v32  ;;  %v1938_v8 = vsub.f32 %v4625_v6, %v1874_v52  ;;  %2678 = vpow2.f32 %v1555_v7  ;;  %v1432_v28 = vsub.f32 %v4039_v61, %v1368_v1 }
 0x2a1   : > { %v2667_v13 = vpop.eup %2666  ;;  %v2033_v26 = vadd.f32 %v2001_v53, %v1969_v34  ;;  %v1970_v35 = vand.u32 2147483647, %v1906_v31  ;;  %v1843_v15 = vmul.f32 %v2665_v23, %v4323_v58  ;;  %v1875_v20 = vmul.f32 %v2665_v23, %v4330_v43  ;;  %v4632_v23 = vld [vmem:[#allocation14_spill] sm:$0xff] }
 0x2a2   : > { %v2669_v38 = vpop.eup %2668  ;;  %v2002_v17 = vand.u32 2147483647, %v1938_v8  ;;  %v1493_v9 = vmul.f32 1.442695, %v1400_v18  ;;  %v1557_v42 = vmul.f32 1.442695, %v1432_v28  ;;  %v1369_v55 = vmax.f32 %v4626_v29, %v4059_v27 }
 0x2a3   : > { %v2671_v33 = vpop.eup %2670  ;;  %v2053_v19 = vadd.f32 %v2052_v59, %v2033_v26  ;;  %v1907_v39 = vsub.f32 %v4627_v14, %v1843_v15  ;;  %v1939_v61 = vsub.f32 %v4628_v56, %v1875_v20  ;;  %v1685_v1 = vadd.f32 %v2669_v38, %v2667_v13  ;;  %v4634_v20 = vld [vmem:[#allocation16_spill] sm:$0xff] }
 0x2a4   : > { %v2673_v5 = vpop.eup %2672  ;;  %v2034_v30 = vadd.f32 %v2002_v17, %v1970_v35  ;;  %2680 = vpow2.f32 %v1493_v9  ;;  %v1401_v58 = vsub.f32 %v4626_v29, %v1369_v55  ;;  %v1433_v43 = vsub.f32 %v4059_v27, %v1369_v55  ;;  %v4635_v9 = vld [vmem:[#allocation73_spill] sm:$0xff] }
 0x2a5   : > { %v1971_v45 = vand.u32 2147483647, %v1907_v39  ;;  %v2003_v4 = vand.u32 2147483647, %v1939_v61  ;;  %2682 = vrcp.f32 %v1685_v1  ;;  %v1686_v24 = vadd.f32 %v2673_v5, %v2671_v33 }
 0x2a6   : > { %v2675_v3 = vpop.eup %2674  ;;  %v2068_v2 = vadd.f32 %v2067_v36, %v2034_v30  ;;  %2684 = vpow2.f32 %v1557_v42  ;;  %v1495_v12 = vmul.f32 1.442695, %v1401_v58  ;;  %v1559_v21 = vmul.f32 1.442695, %v1433_v43  ;;  %v4633_v36 = vld [vmem:[#allocation15_spill] sm:$0xff] }
 0x2a7   : > { %v2035_v37 = vadd.f32 %v2003_v4, %v1971_v45  ;;  %v1844_v63 = vmul.f32 %v2675_v3, %v4339_v46  ;;  %v1876_v16 = vmul.f32 %v2675_v3, %v4350_v60  ;;  %2686 = vrcp.f32 %v1686_v24  ;;  %v4637_v58 = vld [vmem:[#allocation75_spill] sm:$0xff] }
 0x2a8   : > { %v2677_v47 = vpop.eup %2676  ;;  %2688 = vpow2.f32 %v1495_v12  ;;  %v1370_v27 = vmax.f32 %v4629_v22, %v4074_v10 }
 0x2a9   : > { %v1908_v54 = vsub.f32 %v4630_v57, %v1844_v63  ;;  %v1940_v50 = vsub.f32 %v4631_v51, %v1876_v16  ;;  %2690 = vpow2.f32 %v1559_v21  ;;  %v2054_v11 = vadd.f32 %v2053_v19, %v2035_v37  ;;  %v4638_v63 = vld [vmem:[#allocation17_spill] sm:$0xff] }
 0x2aa   : > { %v2679_v41 = vpop.eup %2678  ;;  %v1402_v48 = vsub.f32 %v4629_v22, %v1370_v27  ;;  %v1434_v59 = vsub.f32 %v4074_v10, %v1370_v27 }
 0x2ab   : > { %v1972_v46 = vand.u32 2147483647, %v1908_v54  ;;  %v2004_v40 = vand.u32 2147483647, %v1940_v50  ;;  %v1687_v60 = vadd.f32 %v2679_v41, %v2677_v47 }
 0x2ac   : > { %v1497_v62 = vmul.f32 1.442695, %v1402_v48  ;;  %v1561_v44 = vmul.f32 1.442695, %v1434_v59  ;;  %v4641_v59 = vld [vmem:[#allocation76_spill] sm:$0xff] }
 0x2ad   : > { %v2036_v49 = vadd.f32 %v2004_v40, %v1972_v46  ;;  %2692 = vrcp.f32 %v1687_v60 }
 0x2ae   : > { %v2681_v25 = vpop.eup %2680  ;;  %2694 = vpow2.f32 %v1497_v62 }
 0x2af   : > { %v2683_v32 = vpop.eup %2682  ;;  %2696 = vpow2.f32 %v1561_v44  ;;  %v2069_v52 = vadd.f32 %v2068_v2, %v2036_v49 }
 0x2b0   : > { %v2685_v7 = vpop.eup %2684  ;;  %v1845_v34 = vmul.f32 %v2683_v32, %v2667_v13  ;;  %v1877_v53 = vmul.f32 %v2683_v32, %v2669_v38 }
 0x2b1   : > { %v2687_v0 = vpop.eup %2686  ;;  %v1688_v31 = vadd.f32 %v2685_v7, %v2681_v25 }
 0x2b2   : > { %v2689_v18 = vpop.eup %2688  ;;  %v1909_v10 = vsub.f32 %v4632_v23, %v1845_v34  ;;  %v1941_v6 = vsub.f32 %v4633_v36, %v1877_v53  ;;  %v1846_v8 = vmul.f32 %v2687_v0, %v2671_v33  ;;  %v1878_v28 = vmul.f32 %v2687_v0, %v2673_v5  ;;  %v4636_v5 = vld [vmem:[#allocation74_spill] sm:$0xff]  ;;  %v4643_v53 = vld [vmem:[#allocation79_spill] sm:$0xff] }
 0x2b3   : > { %v2691_v26 = vpop.eup %2690  ;;  %2698 = vrcp.f32 %v1688_v31 }
 0x2b4   : > { %v1973_v35 = vand.u32 2147483647, %v1909_v10  ;;  %v2005_v15 = vand.u32 2147483647, %v1941_v6  ;;  %v1910_v17 = vsub.f32 %v4634_v20, %v1846_v8  ;;  %v1942_v42 = vsub.f32 %v4635_v9, %v1878_v28 }
 0x2b5   : > { %v1689_v29 = vadd.f32 %v2691_v26, %v2689_v18 }
 0x2b6   : > { %v2037_v13 = vadd.f32 %v2005_v15, %v1973_v35  ;;  %v1974_v38 = vand.u32 2147483647, %v1910_v17  ;;  %v2006_v55 = vand.u32 2147483647, %v1942_v42 }
 0x2b7   : > { %v2693_v19 = vpop.eup %2692  ;;  %2700 = vrcp.f32 %v1689_v29 }
 0x2b8   : > { %v2695_v14 = vpop.eup %2694  ;;  %v2038_v39 = vadd.f32 %v2006_v55, %v1974_v38  ;;  %v1847_v56 = vmul.f32 %v2693_v19, %v2677_v47  ;;  %v1879_v61 = vmul.f32 %v2693_v19, %v2679_v41  ;;  %v2055_v33 = vadd.f32 %v2054_v11, %v2037_v13  ;;  %v4639_v47 = vld [vmem:[#allocation18_spill] sm:$0xff]  ;;  %v4640_v41 = vld [vmem:[#allocation77_spill] sm:$0xff] }
 0x2b9   : > { %v2697_v1 = vpop.eup %2696 }
 0x2ba   : > { %v1911_v30 = vsub.f32 %v4636_v5, %v1847_v56  ;;  %v1943_v43 = vsub.f32 %v4637_v58, %v1879_v61  ;;  %v1690_v45 = vadd.f32 %v2697_v1, %v2695_v14  ;;  %v2070_v4 = vadd.f32 %v2069_v52, %v2038_v39 }
 0x2bc   : > { %v1975_v24 = vand.u32 2147483647, %v1911_v30  ;;  %v2007_v3 = vand.u32 2147483647, %v1943_v43  ;;  %2702 = vrcp.f32 %v1690_v45 }
 0x2bd   : > { %v2699_v2 = vpop.eup %2698 }
 0x2be   : > { %v1848_v12 = vmul.f32 %v2699_v2, %v2681_v25  ;;  %v1880_v21 = vmul.f32 %v2699_v2, %v2685_v7  ;;  %v2039_v37 = vadd.f32 %v2007_v3, %v1975_v24  ;;  %v4642_v7 = vld [vmem:[#allocation78_spill] sm:$0xff] }
 0x2c0   : > { %v1912_v16 = vsub.f32 %v4638_v63, %v1848_v12  ;;  %v1944_v22 = vsub.f32 %v4639_v47, %v1880_v21  ;;  %v2056_v27 = vadd.f32 %v2055_v33, %v2039_v37 }
 0x2c1   : > { %v2701_v57 = vpop.eup %2700 }
 0x2c2   : > { %v1976_v54 = vand.u32 2147483647, %v1912_v16  ;;  %v2008_v51 = vand.u32 2147483647, %v1944_v22  ;;  %v1849_v50 = vmul.f32 %v2701_v57, %v2689_v18  ;;  %v1881_v11 = vmul.f32 %v2701_v57, %v2691_v26 }
 0x2c4   : > { %v1945_v48 = vsub.f32 %v4640_v41, %v1881_v11  ;;  %v1913_v46 = vsub.f32 %v4641_v59, %v1849_v50  ;;  %v2040_v40 = vadd.f32 %v2008_v51, %v1976_v54 }
 0x2c6   : > { %v2703_v60 = vpop.eup %2702  ;;  %v2009_v62 = vand.u32 2147483647, %v1945_v48  ;;  %v1977_v44 = vand.u32 2147483647, %v1913_v46  ;;  %v2071_v49 = vadd.f32 %v2070_v4, %v2040_v40 }
 0x2c7   : > { %v1850_v25 = vmul.f32 %v2703_v60, %v2695_v14  ;;  %v1882_v32 = vmul.f32 %v2703_v60, %v2697_v1 }
 0x2c8   : > { %v2041_v52 = vadd.f32 %v2009_v62, %v1977_v44 }
 0x2c9   : > { %v1914_v34 = vsub.f32 %v4642_v7, %v1850_v25  ;;  %v1946_v0 = vsub.f32 %v4643_v53, %v1882_v32 }
 0x2ca   : > { %v2057_v31 = vadd.f32 %v2056_v27, %v2041_v52 }
 0x2cb   : > { %v2010_v18 = vand.u32 2147483647, %v1946_v0  ;;  %v1978_v23 = vand.u32 2147483647, %v1914_v34 }
 0x2cc   : > { %2084 = vst [vmem:[%s121_s25] sm:$0xff] %v2057_v31 }
 0x2cd   : > { %v2042_v10 = vadd.f32 %v2010_v18, %v1978_v23 }
 0x2cf   : > { %v2072_v36 = vadd.f32 %v2071_v49, %v2042_v10 }
 0x2d1   : > { %2085 = vst [vmem:[%s121_s25 + $0x8] sm:$0xff] %v2072_v36 }
 0x2d2   : > { %2745 = shalt.err (!%p2742_p5)
}
 0x2d3   : > { %s2746_s5 = scalar_lea.hbm %s4400_s29, 256  ;;  %s2750_s15 = scalar_lea.hbm %s4448_s1, 512 }
 0x2d4   : > { %p2747_p6 = scmp.ne.s32.totalorder %s4400_s29, %s2746_s5  ;;  %p2751_p12 = scmp.lt.u32.totalorder %s4400_s29, %s4448_s1 }
 0x2d5   : > { %p2752_p0 = scmp.lt.u32.totalorder %s2750_s15, %s2746_s5  ;;  %p2754_p4 = scmp.lt.u32.totalorder %s2746_s5, %s4400_s29 }
 0x2d6   : > { %p2748_p7 = pnand %p2747_p6, %p4644_p8 }
 0x2d7   : > { %p2753_p2 = por %p2752_p0, %p2751_p12 }
 0x2d8   : > { %p2749_p9 = pneg %p2748_p7 }
 0x2d9   : > { %p2755_p10 = por %p2754_p4, %p2753_p2 }
 0x2db   : > { %p2756_p11 = pnand %p2755_p10, %p2749_p9 }
 0x2dd   : > { %2759 = shalt.err (!%p2756_p11)
}
 0x2de   : > { %2255 = dma.vmem_to_hbm [thread:$0]  (%p4644_p8), %s4402_s26, 256, %s4400_s29, %s2087_s30  }
 0x2df PF: > { %p2267_p13 = scmp.ge.s32.totalorder %s2814_s11, 2  ;;  %s2113_s24 = sand.u32 1, %s2794_s6  }
 0x2e0   : > { %p4645_p1 = scmp.ne.s32.totalorder %s4476_s18, 0  ;;  %s2114_s20 = scalar_lea.sflag [#allocation5], %s2113_s24 }
 0x2e2   : > { %p2262_p3 = pnand %p2267_p13, %p4645_p1 }
 0x2e4   : > { %2789 = dma.done.wait (!%p2262_p3), %s2114_s20, 256  }
 0x2e5   : > { %2791 = vsyncadd (!%p2262_p3), %s2114_s20, 4294967040  ;;  %s15_s11 = sadd.s32 1, %s2814_s11   ;;  %s4646_s6 = smov %s2798_s7 }
 0x2e6   : > { %p12_p5 = scmp.ge.s32.totalorder %s15_s11, 4   ;;  %s4647_s7 = smov %s2802_s8 }
 0x2e7   : > { %s4648_s8 = smov %s2884_s19  ;;  %s4649_s9 = smov %s2810_s10 }
 0x2e8   : > { %s4650_s10 = smov %s4652_s14  ;;  %14 = sbr.rel (!%p12_p5) target bundleno = 5 (0x5), region = 71 }
 0x2ef   :  { %2119 = vsyncpa [#allocation4], 1 }
 0x2f0   :  { %2121 = vsyncpa [#allocation4 + $0x1], 1 }
 0x2f1   :  { %2122 = vsyncpa [#allocation5], 1 }
 0x2f2   :  { %2124 = vsyncpa [#allocation5 + $0x1], 1 }

</bundles_post_ra>
